<compile_context>
chip_gen: v7x
topology: tpu7x:2x2x1
jax: 0.10.0
libtpu: 0.0.40
codegen_flags: <defaults>
</compile_context>

<pallas_src>
import functools

import jax
import jax.numpy as jnp
import numpy as np
from jax.experimental import pallas as pl
from jax.experimental.pallas import tpu as pltpu

LN_EPS = 1e-5  # torch.nn.LayerNorm default


def _layernorm(x, gamma, beta):
    mean = jnp.mean(x, axis=-1, keepdims=True)
    var = jnp.mean(jnp.square(x - mean), axis=-1, keepdims=True)
    return (x - mean) * jax.lax.rsqrt(var + LN_EPS) * gamma + beta


# --------------------------------------------------------------------------------------
# Kernel: one (batch_tile, layer) grid step computes a full encoder layer for bt batch
# elements, with the residual stream kept resident in out_ref across the layer axis.
# --------------------------------------------------------------------------------------
def _encoder_kernel(x_ref,
                    ln1_g_ref, ln1_b_ref, wqkv_ref, wo_ref, bo_ref,
                    ln2_g_ref, ln2_b_ref, w1_ref, b1_ref, w2_ref, b2_ref,
                    out_ref, *, heads, dim_head):
    bt, N, D = x_ref.shape
    R = bt * N
    inner = heads * dim_head
    bf16, f32 = jnp.bfloat16, jnp.float32

    layer = pl.program_id(1)

    @pl.when(layer == 0)
    def _():
        out_ref[...] = x_ref[...]          # load input into the resident activation

    x = out_ref[...].reshape(R, D)          # f32 residual stream (VMEM-resident)

    # ---------------- PreNorm + multi-head self-attention ----------------
    xn = _layernorm(x, ln1_g_ref[0, 0], ln1_b_ref[0, 0]).astype(bf16)
    # fused Q/K/V projection, one wide MXU matmul; 1/sqrt(dim_head) folded into Wq
    qkv = jnp.dot(xn, wqkv_ref[0], preferred_element_type=f32)      # (R, 3*inner) f32

    attn = jnp.zeros((R, D), f32)
    for h in range(heads):                  # static unroll; no concatenate at the end
        o = h * dim_head
        qh = qkv[:, o:o + dim_head].reshape(bt, N, dim_head).astype(bf16)
        kh = qkv[:, inner + o:inner + o + dim_head].reshape(bt, N, dim_head).astype(bf16)
        vh = qkv[:, 2 * inner + o:2 * inner + o + dim_head].reshape(bt, N, dim_head).astype(bf16)
        s = jnp.einsum('bnd,bmd->bnm', qh, kh, preferred_element_type=f32)
        s = s - jnp.max(s, axis=-1, keepdims=True)
        p = jnp.exp(s)
        p = p * pl.reciprocal(jnp.sum(p, axis=-1, keepdims=True), approx=True)
        c = jnp.einsum('bnm,bmd->bnd', p.astype(bf16), vh, preferred_element_type=f32)
        # per-head slice of the output projection -> accumulate (replaces concatenate)
        attn = attn + jnp.dot(c.reshape(R, dim_head).astype(bf16), wo_ref[0, h],
                              preferred_element_type=f32)
    x = x + attn + bo_ref[0, 0]             # residual + output-projection bias

    # ---------------- PreNorm + FeedForward (Linear -> Mish -> Linear) ----------------
    xn2 = _layernorm(x, ln2_g_ref[0, 0], ln2_b_ref[0, 0]).astype(bf16)
    hdn = jnp.dot(xn2, w1_ref[0], preferred_element_type=f32) + b1_ref[0, 0]
    # Mish(x) = x * tanh(softplus(x)) = x * ((1+e^x)^2 - 1) / ((1+e^x)^2 + 1)
    #   -> a single exp (EUP) + approx reciprocal (EUP) instead of exp + log1p + tanh
    e = jnp.exp(jnp.minimum(hdn, 20.0))     # clamp: tanh(softplus) saturates to 1 anyway
    t = (1.0 + e) * (1.0 + e)
    hdn = hdn * (t - 1.0) * pl.reciprocal(t + 1.0, approx=True)
    ff = jnp.dot(hdn.astype(bf16), w2_ref[0], preferred_element_type=f32) + b2_ref[0, 0]
    x = x + ff                              # residual

    out_ref[...] = x.reshape(bt, N, D)


# --------------------------------------------------------------------------------------
# Host-side wrapper
# --------------------------------------------------------------------------------------
def _pick_bt(B, N, max_rows=512, min_rows=128):
    """Batch elements per grid step: as many rows per MXU call as fits the row budget,
    but expose >=2 parallel batch steps (v7x has 2 TensorCores) when that keeps
    >= min_rows rows per step."""
    divs = [d for d in range(1, B + 1) if B % d == 0]
    fitting = [d for d in divs if d * N <= max_rows] or [1]
    bt = fitting[-1]
    if B // bt < 2:
        smaller = [d for d in fitting if d < bt and d * N >= min_rows]
        if smaller:
            bt = smaller[-1]
    return bt


def encoder_forward(x, packed, *, heads, dim_head):
    """Run the full depth-layer encoder in ONE pallas_call."""
    B, N, D = x.shape
    depth = packed["wqkv"].shape[0]
    inner = heads * dim_head
    mlp = packed["w1"].shape[-1]
    bt = _pick_bt(B, N)
    n_bt = B // bt

    def wmap(rank):
        # weight/bias blocks are selected by the layer axis only
        return lambda b, l, _r=rank: (l,) + (0,) * (_r - 1)

    in_specs = [
        pl.BlockSpec((bt, N, D), lambda b, l: (b, 0, 0)),          # x
        pl.BlockSpec((1, 1, D), wmap(3)),                          # ln1 gamma
        pl.BlockSpec((1, 1, D), wmap(3)),                          # ln1 beta
        pl.BlockSpec((1, D, 3 * inner), wmap(3)),                  # fused Wq|Wk|Wv (bf16)
        pl.BlockSpec((1, heads, dim_head, D), wmap(4)),            # Wo per head (bf16)
        pl.BlockSpec((1, 1, D), wmap(3)),                          # bo
        pl.BlockSpec((1, 1, D), wmap(3)),                          # ln2 gamma
        pl.BlockSpec((1, 1, D), wmap(3)),                          # ln2 beta
        pl.BlockSpec((1, D, mlp), wmap(3)),                        # W1 (bf16)
        pl.BlockSpec((1, 1, mlp), wmap(3)),                        # b1
        pl.BlockSpec((1, mlp, D), wmap(3)),                        # W2 (bf16)
        pl.BlockSpec((1, 1, D), wmap(3)),                          # b2
    ]
    out_spec = pl.BlockSpec((bt, N, D), lambda b, l: (b, 0, 0))

    kernel = functools.partial(_encoder_kernel, heads=heads, dim_head=dim_head)
    return pl.pallas_call(
        kernel,
        out_shape=jax.ShapeDtypeStruct((B, N, D), jnp.float32),
        grid=(n_bt, depth),
        in_specs=in_specs,
        out_specs=out_spec,
        compiler_params=pltpu.CompilerParams(
            dimension_semantics=("parallel", "arbitrary")),
    )(x, packed["ln1_g"], packed["ln1_b"], packed["wqkv"], packed["wo"],
      packed["bo"], packed["ln2_g"], packed["ln2_b"], packed["w1"],
      packed["b1"], packed["w2"], packed["b2"])


# --------------------------------------------------------------------------------------
# Parameters: PyTorch-style f32 params + packing into the kernel's fused/bf16 layout
# --------------------------------------------------------------------------------------
def make_params(key, depth, dim, mlp_dim, heads, dim_head):
    inner = heads * dim_head
    params = []
    for _ in range(depth):
        keys = jax.random.split(key, 8)
        key = keys[0]
        p = {
            "ln1_g": jnp.ones((1, dim), jnp.float32),
            "ln1_b": jnp.zeros((1, dim), jnp.float32),
            "wq": 0.05 * jax.random.normal(keys[1], (dim, inner), jnp.float32),
            "wk": 0.05 * jax.random.normal(keys[2], (dim, inner), jnp.float32),
            "wv": 0.05 * jax.random.normal(keys[3], (dim, inner), jnp.float32),
            "wo": 0.05 * jax.random.normal(keys[4], (inner, dim), jnp.float32),
            "bo": 0.01 * jax.random.normal(keys[5], (1, dim), jnp.float32),
            "ln2_g": jnp.ones((1, dim), jnp.float32),
            "ln2_b": jnp.zeros((1, dim), jnp.float32),
            "w1": 0.05 * jax.random.normal(keys[6], (dim, mlp_dim), jnp.float32),
            "b1": jnp.zeros((1, mlp_dim), jnp.float32),
            "w2": 0.05 * jax.random.normal(keys[7], (mlp_dim, dim), jnp.float32),
            "b2": jnp.zeros((1, dim), jnp.float32),
        }
        params.append(p)
    return params


def pack_params(layer_params, heads, dim_head):
    depth = len(layer_params)
    dim = layer_params[0]["wq"].shape[0]
    scale = dim_head ** (-0.5)
    st = lambda k: jnp.stack([p[k] for p in layer_params])
    wq = jnp.stack([p["wq"] * scale for p in layer_params])          # fold softmax scale
    wqkv = jnp.concatenate([wq, st("wk"), st("wv")], axis=-1).astype(jnp.bfloat16)
    wo = st("wo").reshape(depth, heads, dim_head, dim).astype(jnp.bfloat16)
    return {
        "ln1_g": st("ln1_g"), "ln1_b": st("ln1_b"),
        "wqkv": wqkv, "wo": wo, "bo": st("bo"),
        "ln2_g": st("ln2_g"), "ln2_b": st("ln2_b"),
        "w1": st("w1").astype(jnp.bfloat16), "b1": st("b1"),
        "w2": st("w2").astype(jnp.bfloat16), "b2": st("b2"),
    }


# --------------------------------------------------------------------------------------
# References for verification
# --------------------------------------------------------------------------------------
def _ref_layer_f32(x, p, heads, dim_head):
    """Pure-f32 PyTorch-semantics reference (one encoder layer)."""
    xn = _layernorm(x, p["ln1_g"][0], p["ln1_b"][0])
    q, k, v = xn @ p["wq"], xn @ p["wk"], xn @ p["wv"]
    B, N, _ = x.shape
    split = lambda t: t.reshape(B, N, heads, dim_head).transpose(0, 2, 1, 3)
    qh, kh, vh = split(q), split(k), split(v)
    s = jnp.einsum("bhnd,bhmd->bhnm", qh, kh) * (dim_head ** -0.5)
    prob = jax.nn.softmax(s, axis=-1)
    ctx = jnp.einsum("bhnm,bhmd->bhnd", prob, vh)
    ctx = ctx.transpose(0, 2, 1, 3).reshape(B, N, heads * dim_head)
    x = x + ctx @ p["wo"] + p["bo"][0]
    xn2 = _layernorm(x, p["ln2_g"][0], p["ln2_b"][0])
    h = xn2 @ p["w1"] + p["b1"][0]
    h = h * jnp.tanh(jax.nn.softplus(h))
    return x + h @ p["w2"] + p["b2"][0]


def _ref_kernel_math(x, kp, heads, dim_head):
    """Plain-JAX mirror of the kernel math (bf16 matmul operands, f32 accumulation)."""
    bf16, f32 = jnp.bfloat16, jnp.float32
    B, N, D = x.shape
    R = B * N
    inner = heads * dim_head
    depth = kp["wqkv"].shape[0]
    xr = x.reshape(R, D)
    for l in range(depth):
        xn = _layernorm(xr, kp["ln1_g"][l, 0], kp["ln1_b"][l, 0]).astype(bf16)
        qkv = jnp.dot(xn, kp["wqkv"][l], preferred_element_type=f32)
        attn = jnp.zeros((R, D), f32)
        for h in range(heads):
            o = h * dim_head
            qh = qkv[:, o:o + dim_head].reshape(B, N, dim_head).astype(bf16)
            kh = qkv[:, inner + o:inner + o + dim_head].reshape(B, N, dim_head).astype(bf16)
            vh = qkv[:, 2 * inner + o:2 * inner + o + dim_head].reshape(B, N, dim_head).astype(bf16)
            s = jnp.einsum('bnd,bmd->bnm', qh, kh, preferred_element_type=f32)
            s = s - jnp.max(s, axis=-1, keepdims=True)
            p_ = jnp.exp(s)
            p_ = p_ / jnp.sum(p_, axis=-1, keepdims=True)
            c = jnp.einsum('bnm,bmd->bnd', p_.astype(bf16), vh, preferred_element_type=f32)
            attn = attn + jnp.dot(c.reshape(R, dim_head).astype(bf16), kp["wo"][l, h],
                                  preferred_element_type=f32)
        xr = xr + attn + kp["bo"][l, 0]
        xn2 = _layernorm(xr, kp["ln2_g"][l, 0], kp["ln2_b"][l, 0]).astype(bf16)
        hdn = jnp.dot(xn2, kp["w1"][l], preferred_element_type=f32) + kp["b1"][l, 0]
        hdn = hdn * jnp.tanh(jax.nn.softplus(hdn))
        ff = jnp.dot(hdn.astype(bf16), kp["w2"][l], preferred_element_type=f32) + kp["b2"][l, 0]
        xr = xr + ff
    return xr.reshape(B, N, D)


if __name__ == "__main__":
    # Small shapes consistent with Encoder.forward: x is (batch, seq, dim)
    B, N, DIM = 2, 8, 32
    MLP_DIM = 64
    DEPTH, HEADS, DIM_HEAD = 2, 4, 16

    key = jax.random.PRNGKey(0)
    kx, kp = jax.random.split(key)
    x = jax.random.normal(kx, (B, N, DIM), jnp.float32)
    layer_params = make_params(kp, DEPTH, DIM, MLP_DIM, HEADS, DIM_HEAD)
    packed = pack_params(layer_params, HEADS, DIM_HEAD)

    out = encoder_forward(x, packed, heads=HEADS, dim_head=DIM_HEAD)
    out = jax.block_until_ready(out)

    # 1) tight structural check vs. the same bf16-matmul math in plain JAX
    ref_bf16 = _ref_kernel_math(x, packed, HEADS, DIM_HEAD)
    np.testing.assert_allclose(np.asarray(out), np.asarray(ref_bf16), rtol=1e-2, atol=1e-2)

    # 2) fidelity check vs. the full-f32 PyTorch-semantics reference
    ref_f32 = x
    for p in layer_params:
        ref_f32 = _ref_layer_f32(ref_f32, p, HEADS, DIM_HEAD)
    np.testing.assert_allclose(np.asarray(out), np.asarray(ref_f32), rtol=5e-2, atol=5e-2)

    print("KERNEL_OK")
</pallas_src>

<mosaic_0001>
module attributes {stable_mosaic.version = 11 : i64} {
  func.func @_encoder_kernel(%arg0: i32, %arg1: i32, %arg2: memref<2x8x32xf32, #tpu.memory_space<vmem>>, %arg3: memref<1x1x32xf32, #tpu.memory_space<vmem>>, %arg4: memref<1x1x32xf32, #tpu.memory_space<vmem>>, %arg5: memref<1x32x192xbf16, #tpu.memory_space<vmem>>, %arg6: memref<1x4x16x32xbf16, #tpu.memory_space<vmem>>, %arg7: memref<1x1x32xf32, #tpu.memory_space<vmem>>, %arg8: memref<1x1x32xf32, #tpu.memory_space<vmem>>, %arg9: memref<1x1x32xf32, #tpu.memory_space<vmem>>, %arg10: memref<1x32x64xbf16, #tpu.memory_space<vmem>>, %arg11: memref<1x1x64xf32, #tpu.memory_space<vmem>>, %arg12: memref<1x64x32xbf16, #tpu.memory_space<vmem>>, %arg13: memref<1x1x32xf32, #tpu.memory_space<vmem>>, %arg14: memref<2x8x32xf32, #tpu.memory_space<vmem>>) attributes {dimension_semantics = [#tpu.dimension_semantics<parallel>, #tpu.dimension_semantics<arbitrary>], iteration_bounds = array<i64: 1, 2>, scalar_prefetch = 0 : i64, scratch_operands = 0 : i64, tpu.core_type = #tpu.core_type<tc>, window_params = [{transform_indices = @transform_0, window_bounds = array<i64: 2, 8, 32>}, {transform_indices = @transform_1, window_bounds = array<i64: 1, 1, 32>}, {transform_indices = @transform_2, window_bounds = array<i64: 1, 1, 32>}, {transform_indices = @transform_3, window_bounds = array<i64: 1, 32, 192>}, {transform_indices = @transform_4, window_bounds = array<i64: 1, 4, 16, 32>}, {transform_indices = @transform_5, window_bounds = array<i64: 1, 1, 32>}, {transform_indices = @transform_6, window_bounds = array<i64: 1, 1, 32>}, {transform_indices = @transform_7, window_bounds = array<i64: 1, 1, 32>}, {transform_indices = @transform_8, window_bounds = array<i64: 1, 32, 64>}, {transform_indices = @transform_9, window_bounds = array<i64: 1, 1, 64>}, {transform_indices = @transform_10, window_bounds = array<i64: 1, 64, 32>}, {transform_indices = @transform_11, window_bounds = array<i64: 1, 1, 32>}, {transform_indices = @transform_12, window_bounds = array<i64: 2, 8, 32>}]} {
    %c0_i32 = arith.constant 0 : i32
    %0 = arith.cmpi eq, %arg1, %c0_i32 : i32
    %1 = arith.extui %0 : i1 to i32
    %c0_i32_0 = arith.constant 0 : i32
    %2 = arith.cmpi ne, %1, %c0_i32_0 : i32
    scf.if %2 {
      %c0_87 = arith.constant 0 : index
      %c0_88 = arith.constant 0 : index
      %c0_89 = arith.constant 0 : index
      %220 = vector.load %arg2[%c0_87, %c0_88, %c0_89] : memref<2x8x32xf32, #tpu.memory_space<vmem>>, vector<2x8x32xf32>
      %c0_90 = arith.constant 0 : index
      %c0_91 = arith.constant 0 : index
      %c0_92 = arith.constant 0 : index
      %221 = vector.load %arg14[%c0_90, %c0_91, %c0_92] : memref<2x8x32xf32, #tpu.memory_space<vmem>>, vector<2x8x32xf32>
      tpu.vector_store %arg14[%c0_90, %c0_91, %c0_92], %220 {strides = array<i32>} : memref<2x8x32xf32, #tpu.memory_space<vmem>>, vector<2x8x32xf32>,
    } else {
    }
    %c0 = arith.constant 0 : index
    %c0_1 = arith.constant 0 : index
    %c0_2 = arith.constant 0 : index
    %3 = vector.load %arg14[%c0, %c0_1, %c0_2] : memref<2x8x32xf32, #tpu.memory_space<vmem>>, vector<2x8x32xf32>
    %4 = vector.shape_cast %3 : vector<2x8x32xf32> to vector<16x32xf32>
    %c0_3 = arith.constant 0 : index
    %c0_4 = arith.constant 0 : index
    %c0_5 = arith.constant 0 : index
    %5 = vector.load %arg3[%c0_3, %c0_4, %c0_5] : memref<1x1x32xf32, #tpu.memory_space<vmem>>, vector<1x1x32xf32>
    %6 = vector.shape_cast %5 : vector<1x1x32xf32> to vector<32xf32>
    %c0_6 = arith.constant 0 : index
    %c0_7 = arith.constant 0 : index
    %c0_8 = arith.constant 0 : index
    %7 = vector.load %arg4[%c0_6, %c0_7, %c0_8] : memref<1x1x32xf32, #tpu.memory_space<vmem>>, vector<1x1x32xf32>
    %8 = vector.shape_cast %7 : vector<1x1x32xf32> to vector<32xf32>
    %cst = arith.constant dense<0.000000e+00> : vector<16xf32>
    %9 = vector.multi_reduction <add>, %4, %cst [1] : vector<16x32xf32> to vector<16xf32>
    %10 = vector.shape_cast %9 : vector<16xf32> to vector<16x1xf32>
    %cst_9 = arith.constant 3.200000e+01 : f32
    %11 = vector.broadcast %cst_9 : f32 to vector<16x1xf32>
    %12 = arith.divf %10, %11 : vector<16x1xf32>
    %13 = vector.broadcast %12 : vector<16x1xf32> to vector<16x32xf32>
    %14 = arith.subf %4, %13 : vector<16x32xf32>
    %15 = arith.mulf %14, %14 : vector<16x32xf32>
    %cst_10 = arith.constant dense<0.000000e+00> : vector<16xf32>
    %16 = vector.multi_reduction <add>, %15, %cst_10 [1] : vector<16x32xf32> to vector<16xf32>
    %17 = vector.shape_cast %16 : vector<16xf32> to vector<16x1xf32>
    %cst_11 = arith.constant 3.200000e+01 : f32
    %18 = vector.broadcast %cst_11 : f32 to vector<16x1xf32>
    %19 = arith.divf %17, %18 : vector<16x1xf32>
    %20 = vector.broadcast %12 : vector<16x1xf32> to vector<16x32xf32>
    %21 = arith.subf %4, %20 : vector<16x32xf32>
    %cst_12 = arith.constant 9.99999974E-6 : f32
    %22 = vector.broadcast %cst_12 : f32 to vector<16x1xf32>
    %23 = arith.addf %19, %22 : vector<16x1xf32>
    %24 = math.rsqrt %23 : vector<16x1xf32>
    %25 = vector.broadcast %24 : vector<16x1xf32> to vector<16x32xf32>
    %26 = arith.mulf %21, %25 : vector<16x32xf32>
    %27 = vector.shape_cast %6 : vector<32xf32> to vector<1x32xf32>
    %28 = vector.broadcast %27 : vector<1x32xf32> to vector<16x32xf32>
    %29 = arith.mulf %26, %28 : vector<16x32xf32>
    %30 = vector.shape_cast %8 : vector<32xf32> to vector<1x32xf32>
    %31 = vector.broadcast %30 : vector<1x32xf32> to vector<16x32xf32>
    %32 = arith.addf %29, %31 : vector<16x32xf32>
    %33 = arith.truncf %32 : vector<16x32xf32> to vector<16x32xbf16>
    %c0_13 = arith.constant 0 : index
    %c0_14 = arith.constant 0 : index
    %c0_15 = arith.constant 0 : index
    %34 = vector.load %arg5[%c0_13, %c0_14, %c0_15] : memref<1x32x192xbf16, #tpu.memory_space<vmem>>, vector<1x32x192xbf16>
    %35 = vector.shape_cast %34 : vector<1x32x192xbf16> to vector<32x192xbf16>
    %cst_16 = arith.constant dense<0.000000e+00> : vector<16x192xf32>
    %36 = tpu.matmul %33, %35, %cst_16 {dimension_numbers = #tpu.dot_dimension_numbers<[1], [0], [0], [1], [0, 0, 1, 1], [], []>} : vector<16x32xbf16>, vector<32x192xbf16>, vector<16x192xf32> -> vector<16x192xf32>
    %cst_17 = arith.constant 0.000000e+00 : f32
    %37 = vector.broadcast %cst_17 : f32 to vector<16x32xf32>
    %38 = vector.extract_strided_slice %36 {offsets = [0, 0], sizes = [16, 16], strides = [1, 1]} : vector<16x192xf32> to vector<16x16xf32>
    %39 = vector.shape_cast %38 : vector<16x16xf32> to vector<2x8x16xf32>
    %40 = arith.truncf %39 : vector<2x8x16xf32> to vector<2x8x16xbf16>
    %41 = vector.extract_strided_slice %36 {offsets = [0, 64], sizes = [16, 16], strides = [1, 1]} : vector<16x192xf32> to vector<16x16xf32>
    %42 = vector.shape_cast %41 : vector<16x16xf32> to vector<2x8x16xf32>
    %43 = arith.truncf %42 : vector<2x8x16xf32> to vector<2x8x16xbf16>
    %44 = vector.extract_strided_slice %36 {offsets = [0, 128], sizes = [16, 16], strides = [1, 1]} : vector<16x192xf32> to vector<16x16xf32>
    %45 = vector.shape_cast %44 : vector<16x16xf32> to vector<2x8x16xf32>
    %46 = arith.truncf %45 : vector<2x8x16xf32> to vector<2x8x16xbf16>
    "tpu.trace_start"() <{level = 10 : i32, message = "bnd,bmd->bnm"}> : () -> ()
    %cst_18 = arith.constant dense<0.000000e+00> : vector<2x8x8xf32>
    %47 = tpu.matmul %40, %43, %cst_18 {dimension_numbers = #tpu.dot_dimension_numbers<[2], [2], [1], [1], [0, 0, 0, 1, 1, 1], [0], [0]>} : vector<2x8x16xbf16>, vector<2x8x16xbf16>, vector<2x8x8xf32> -> vector<2x8x8xf32>
    "tpu.trace_stop"() : () -> ()
    %cst_19 = arith.constant dense<0xFF800000> : vector<2x8xf32>
    %48 = vector.multi_reduction <maximumf>, %47, %cst_19 [2] : vector<2x8x8xf32> to vector<2x8xf32>
    %49 = vector.shape_cast %48 : vector<2x8xf32> to vector<2x8x1xf32>
    %50 = vector.broadcast %49 : vector<2x8x1xf32> to vector<2x8x8xf32>
    %51 = arith.subf %47, %50 : vector<2x8x8xf32>
    %52 = math.exp %51 : vector<2x8x8xf32>
    %cst_20 = arith.constant dense<0.000000e+00> : vector<2x8xf32>
    %53 = vector.multi_reduction <add>, %52, %cst_20 [2] : vector<2x8x8xf32> to vector<2x8xf32>
    %54 = vector.shape_cast %53 : vector<2x8xf32> to vector<2x8x1xf32>
    %55 = tpu.reciprocal %54 {approx = true} : vector<2x8x1xf32> -> vector<2x8x1xf32>
    %56 = vector.broadcast %55 : vector<2x8x1xf32> to vector<2x8x8xf32>
    %57 = arith.mulf %52, %56 : vector<2x8x8xf32>
    %58 = arith.truncf %57 : vector<2x8x8xf32> to vector<2x8x8xbf16>
    "tpu.trace_start"() <{level = 10 : i32, message = "bnm,bmd->bnd"}> : () -> ()
    %cst_21 = arith.constant dense<0.000000e+00> : vector<2x8x16xf32>
    %59 = tpu.matmul %58, %46, %cst_21 {dimension_numbers = #tpu.dot_dimension_numbers<[2], [1], [1], [2], [0, 0, 0, 1, 1, 2], [0], [0]>} : vector<2x8x8xbf16>, vector<2x8x16xbf16>, vector<2x8x16xf32> -> vector<2x8x16xf32>
    "tpu.trace_stop"() : () -> ()
    %60 = vector.shape_cast %59 : vector<2x8x16xf32> to vector<16x16xf32>
    %61 = arith.truncf %60 : vector<16x16xf32> to vector<16x16xbf16>
    %c0_22 = arith.constant 0 : index
    %c0_23 = arith.constant 0 : index
    %c0_24 = arith.constant 0 : index
    %c0_25 = arith.constant 0 : index
    %62 = vector.load %arg6[%c0_22, %c0_23, %c0_24, %c0_25] : memref<1x4x16x32xbf16, #tpu.memory_space<vmem>>, vector<1x1x16x32xbf16>
    %63 = vector.shape_cast %62 : vector<1x1x16x32xbf16> to vector<16x32xbf16>
    %cst_26 = arith.constant dense<0.000000e+00> : vector<16x32xf32>
    %64 = tpu.matmul %61, %63, %cst_26 {dimension_numbers = #tpu.dot_dimension_numbers<[1], [0], [0], [1], [0, 0, 1, 1], [], []>} : vector<16x16xbf16>, vector<16x32xbf16>, vector<16x32xf32> -> vector<16x32xf32>
    %65 = arith.addf %37, %64 : vector<16x32xf32>
    %66 = vector.extract_strided_slice %36 {offsets = [0, 16], sizes = [16, 16], strides = [1, 1]} : vector<16x192xf32> to vector<16x16xf32>
    %67 = vector.shape_cast %66 : vector<16x16xf32> to vector<2x8x16xf32>
    %68 = arith.truncf %67 : vector<2x8x16xf32> to vector<2x8x16xbf16>
    %69 = vector.extract_strided_slice %36 {offsets = [0, 80], sizes = [16, 16], strides = [1, 1]} : vector<16x192xf32> to vector<16x16xf32>
    %70 = vector.shape_cast %69 : vector<16x16xf32> to vector<2x8x16xf32>
    %71 = arith.truncf %70 : vector<2x8x16xf32> to vector<2x8x16xbf16>
    %72 = vector.extract_strided_slice %36 {offsets = [0, 144], sizes = [16, 16], strides = [1, 1]} : vector<16x192xf32> to vector<16x16xf32>
    %73 = vector.shape_cast %72 : vector<16x16xf32> to vector<2x8x16xf32>
    %74 = arith.truncf %73 : vector<2x8x16xf32> to vector<2x8x16xbf16>
    "tpu.trace_start"() <{level = 10 : i32, message = "bnd,bmd->bnm"}> : () -> ()
    %cst_27 = arith.constant dense<0.000000e+00> : vector<2x8x8xf32>
    %75 = tpu.matmul %68, %71, %cst_27 {dimension_numbers = #tpu.dot_dimension_numbers<[2], [2], [1], [1], [0, 0, 0, 1, 1, 1], [0], [0]>} : vector<2x8x16xbf16>, vector<2x8x16xbf16>, vector<2x8x8xf32> -> vector<2x8x8xf32>
    "tpu.trace_stop"() : () -> ()
    %cst_28 = arith.constant dense<0xFF800000> : vector<2x8xf32>
    %76 = vector.multi_reduction <maximumf>, %75, %cst_28 [2] : vector<2x8x8xf32> to vector<2x8xf32>
    %77 = vector.shape_cast %76 : vector<2x8xf32> to vector<2x8x1xf32>
    %78 = vector.broadcast %77 : vector<2x8x1xf32> to vector<2x8x8xf32>
    %79 = arith.subf %75, %78 : vector<2x8x8xf32>
    %80 = math.exp %79 : vector<2x8x8xf32>
    %cst_29 = arith.constant dense<0.000000e+00> : vector<2x8xf32>
    %81 = vector.multi_reduction <add>, %80, %cst_29 [2] : vector<2x8x8xf32> to vector<2x8xf32>
    %82 = vector.shape_cast %81 : vector<2x8xf32> to vector<2x8x1xf32>
    %83 = tpu.reciprocal %82 {approx = true} : vector<2x8x1xf32> -> vector<2x8x1xf32>
    %84 = vector.broadcast %83 : vector<2x8x1xf32> to vector<2x8x8xf32>
    %85 = arith.mulf %80, %84 : vector<2x8x8xf32>
    %86 = arith.truncf %85 : vector<2x8x8xf32> to vector<2x8x8xbf16>
    "tpu.trace_start"() <{level = 10 : i32, message = "bnm,bmd->bnd"}> : () -> ()
    %cst_30 = arith.constant dense<0.000000e+00> : vector<2x8x16xf32>
    %87 = tpu.matmul %86, %74, %cst_30 {dimension_numbers = #tpu.dot_dimension_numbers<[2], [1], [1], [2], [0, 0, 0, 1, 1, 2], [0], [0]>} : vector<2x8x8xbf16>, vector<2x8x16xbf16>, vector<2x8x16xf32> -> vector<2x8x16xf32>
    "tpu.trace_stop"() : () -> ()
    %88 = vector.shape_cast %87 : vector<2x8x16xf32> to vector<16x16xf32>
    %89 = arith.truncf %88 : vector<16x16xf32> to vector<16x16xbf16>
    %c0_31 = arith.constant 0 : index
    %c1 = arith.constant 1 : index
    %c0_32 = arith.constant 0 : index
    %c0_33 = arith.constant 0 : index
    %90 = vector.load %arg6[%c0_31, %c1, %c0_32, %c0_33] : memref<1x4x16x32xbf16, #tpu.memory_space<vmem>>, vector<1x1x16x32xbf16>
    %91 = vector.shape_cast %90 : vector<1x1x16x32xbf16> to vector<16x32xbf16>
    %cst_34 = arith.constant dense<0.000000e+00> : vector<16x32xf32>
    %92 = tpu.matmul %89, %91, %cst_34 {dimension_numbers = #tpu.dot_dimension_numbers<[1], [0], [0], [1], [0, 0, 1, 1], [], []>} : vector<16x16xbf16>, vector<16x32xbf16>, vector<16x32xf32> -> vector<16x32xf32>
    %93 = arith.addf %65, %92 : vector<16x32xf32>
    %94 = vector.extract_strided_slice %36 {offsets = [0, 32], sizes = [16, 16], strides = [1, 1]} : vector<16x192xf32> to vector<16x16xf32>
    %95 = vector.shape_cast %94 : vector<16x16xf32> to vector<2x8x16xf32>
    %96 = arith.truncf %95 : vector<2x8x16xf32> to vector<2x8x16xbf16>
    %97 = vector.extract_strided_slice %36 {offsets = [0, 96], sizes = [16, 16], strides = [1, 1]} : vector<16x192xf32> to vector<16x16xf32>
    %98 = vector.shape_cast %97 : vector<16x16xf32> to vector<2x8x16xf32>
    %99 = arith.truncf %98 : vector<2x8x16xf32> to vector<2x8x16xbf16>
    %100 = vector.extract_strided_slice %36 {offsets = [0, 160], sizes = [16, 16], strides = [1, 1]} : vector<16x192xf32> to vector<16x16xf32>
    %101 = vector.shape_cast %100 : vector<16x16xf32> to vector<2x8x16xf32>
    %102 = arith.truncf %101 : vector<2x8x16xf32> to vector<2x8x16xbf16>
    "tpu.trace_start"() <{level = 10 : i32, message = "bnd,bmd->bnm"}> : () -> ()
    %cst_35 = arith.constant dense<0.000000e+00> : vector<2x8x8xf32>
    %103 = tpu.matmul %96, %99, %cst_35 {dimension_numbers = #tpu.dot_dimension_numbers<[2], [2], [1], [1], [0, 0, 0, 1, 1, 1], [0], [0]>} : vector<2x8x16xbf16>, vector<2x8x16xbf16>, vector<2x8x8xf32> -> vector<2x8x8xf32>
    "tpu.trace_stop"() : () -> ()
    %cst_36 = arith.constant dense<0xFF800000> : vector<2x8xf32>
    %104 = vector.multi_reduction <maximumf>, %103, %cst_36 [2] : vector<2x8x8xf32> to vector<2x8xf32>
    %105 = vector.shape_cast %104 : vector<2x8xf32> to vector<2x8x1xf32>
    %106 = vector.broadcast %105 : vector<2x8x1xf32> to vector<2x8x8xf32>
    %107 = arith.subf %103, %106 : vector<2x8x8xf32>
    %108 = math.exp %107 : vector<2x8x8xf32>
    %cst_37 = arith.constant dense<0.000000e+00> : vector<2x8xf32>
    %109 = vector.multi_reduction <add>, %108, %cst_37 [2] : vector<2x8x8xf32> to vector<2x8xf32>
    %110 = vector.shape_cast %109 : vector<2x8xf32> to vector<2x8x1xf32>
    %111 = tpu.reciprocal %110 {approx = true} : vector<2x8x1xf32> -> vector<2x8x1xf32>
    %112 = vector.broadcast %111 : vector<2x8x1xf32> to vector<2x8x8xf32>
    %113 = arith.mulf %108, %112 : vector<2x8x8xf32>
    %114 = arith.truncf %113 : vector<2x8x8xf32> to vector<2x8x8xbf16>
    "tpu.trace_start"() <{level = 10 : i32, message = "bnm,bmd->bnd"}> : () -> ()
    %cst_38 = arith.constant dense<0.000000e+00> : vector<2x8x16xf32>
    %115 = tpu.matmul %114, %102, %cst_38 {dimension_numbers = #tpu.dot_dimension_numbers<[2], [1], [1], [2], [0, 0, 0, 1, 1, 2], [0], [0]>} : vector<2x8x8xbf16>, vector<2x8x16xbf16>, vector<2x8x16xf32> -> vector<2x8x16xf32>
    "tpu.trace_stop"() : () -> ()
    %116 = vector.shape_cast %115 : vector<2x8x16xf32> to vector<16x16xf32>
    %117 = arith.truncf %116 : vector<16x16xf32> to vector<16x16xbf16>
    %c0_39 = arith.constant 0 : index
    %c2 = arith.constant 2 : index
    %c0_40 = arith.constant 0 : index
    %c0_41 = arith.constant 0 : index
    %118 = vector.load %arg6[%c0_39, %c2, %c0_40, %c0_41] : memref<1x4x16x32xbf16, #tpu.memory_space<vmem>>, vector<1x1x16x32xbf16>
    %119 = vector.shape_cast %118 : vector<1x1x16x32xbf16> to vector<16x32xbf16>
    %cst_42 = arith.constant dense<0.000000e+00> : vector<16x32xf32>
    %120 = tpu.matmul %117, %119, %cst_42 {dimension_numbers = #tpu.dot_dimension_numbers<[1], [0], [0], [1], [0, 0, 1, 1], [], []>} : vector<16x16xbf16>, vector<16x32xbf16>, vector<16x32xf32> -> vector<16x32xf32>
    %121 = arith.addf %93, %120 : vector<16x32xf32>
    %122 = vector.extract_strided_slice %36 {offsets = [0, 48], sizes = [16, 16], strides = [1, 1]} : vector<16x192xf32> to vector<16x16xf32>
    %123 = vector.shape_cast %122 : vector<16x16xf32> to vector<2x8x16xf32>
    %124 = arith.truncf %123 : vector<2x8x16xf32> to vector<2x8x16xbf16>
    %125 = vector.extract_strided_slice %36 {offsets = [0, 112], sizes = [16, 16], strides = [1, 1]} : vector<16x192xf32> to vector<16x16xf32>
    %126 = vector.shape_cast %125 : vector<16x16xf32> to vector<2x8x16xf32>
    %127 = arith.truncf %126 : vector<2x8x16xf32> to vector<2x8x16xbf16>
    %128 = vector.extract_strided_slice %36 {offsets = [0, 176], sizes = [16, 16], strides = [1, 1]} : vector<16x192xf32> to vector<16x16xf32>
    %129 = vector.shape_cast %128 : vector<16x16xf32> to vector<2x8x16xf32>
    %130 = arith.truncf %129 : vector<2x8x16xf32> to vector<2x8x16xbf16>
    "tpu.trace_start"() <{level = 10 : i32, message = "bnd,bmd->bnm"}> : () -> ()
    %cst_43 = arith.constant dense<0.000000e+00> : vector<2x8x8xf32>
    %131 = tpu.matmul %124, %127, %cst_43 {dimension_numbers = #tpu.dot_dimension_numbers<[2], [2], [1], [1], [0, 0, 0, 1, 1, 1], [0], [0]>} : vector<2x8x16xbf16>, vector<2x8x16xbf16>, vector<2x8x8xf32> -> vector<2x8x8xf32>
    "tpu.trace_stop"() : () -> ()
    %cst_44 = arith.constant dense<0xFF800000> : vector<2x8xf32>
    %132 = vector.multi_reduction <maximumf>, %131, %cst_44 [2] : vector<2x8x8xf32> to vector<2x8xf32>
    %133 = vector.shape_cast %132 : vector<2x8xf32> to vector<2x8x1xf32>
    %134 = vector.broadcast %133 : vector<2x8x1xf32> to vector<2x8x8xf32>
    %135 = arith.subf %131, %134 : vector<2x8x8xf32>
    %136 = math.exp %135 : vector<2x8x8xf32>
    %cst_45 = arith.constant dense<0.000000e+00> : vector<2x8xf32>
    %137 = vector.multi_reduction <add>, %136, %cst_45 [2] : vector<2x8x8xf32> to vector<2x8xf32>
    %138 = vector.shape_cast %137 : vector<2x8xf32> to vector<2x8x1xf32>
    %139 = tpu.reciprocal %138 {approx = true} : vector<2x8x1xf32> -> vector<2x8x1xf32>
    %140 = vector.broadcast %139 : vector<2x8x1xf32> to vector<2x8x8xf32>
    %141 = arith.mulf %136, %140 : vector<2x8x8xf32>
    %142 = arith.truncf %141 : vector<2x8x8xf32> to vector<2x8x8xbf16>
    "tpu.trace_start"() <{level = 10 : i32, message = "bnm,bmd->bnd"}> : () -> ()
    %cst_46 = arith.constant dense<0.000000e+00> : vector<2x8x16xf32>
    %143 = tpu.matmul %142, %130, %cst_46 {dimension_numbers = #tpu.dot_dimension_numbers<[2], [1], [1], [2], [0, 0, 0, 1, 1, 2], [0], [0]>} : vector<2x8x8xbf16>, vector<2x8x16xbf16>, vector<2x8x16xf32> -> vector<2x8x16xf32>
    "tpu.trace_stop"() : () -> ()
    %144 = vector.shape_cast %143 : vector<2x8x16xf32> to vector<16x16xf32>
    %145 = arith.truncf %144 : vector<16x16xf32> to vector<16x16xbf16>
    %c0_47 = arith.constant 0 : index
    %c3 = arith.constant 3 : index
    %c0_48 = arith.constant 0 : index
    %c0_49 = arith.constant 0 : index
    %146 = vector.load %arg6[%c0_47, %c3, %c0_48, %c0_49] : memref<1x4x16x32xbf16, #tpu.memory_space<vmem>>, vector<1x1x16x32xbf16>
    %147 = vector.shape_cast %146 : vector<1x1x16x32xbf16> to vector<16x32xbf16>
    %cst_50 = arith.constant dense<0.000000e+00> : vector<16x32xf32>
    %148 = tpu.matmul %145, %147, %cst_50 {dimension_numbers = #tpu.dot_dimension_numbers<[1], [0], [0], [1], [0, 0, 1, 1], [], []>} : vector<16x16xbf16>, vector<16x32xbf16>, vector<16x32xf32> -> vector<16x32xf32>
    %149 = arith.addf %121, %148 : vector<16x32xf32>
    %150 = arith.addf %4, %149 : vector<16x32xf32>
    %c0_51 = arith.constant 0 : index
    %c0_52 = arith.constant 0 : index
    %c0_53 = arith.constant 0 : index
    %151 = vector.load %arg7[%c0_51, %c0_52, %c0_53] : memref<1x1x32xf32, #tpu.memory_space<vmem>>, vector<1x1x32xf32>
    %152 = vector.shape_cast %151 : vector<1x1x32xf32> to vector<32xf32>
    %153 = vector.shape_cast %152 : vector<32xf32> to vector<1x32xf32>
    %154 = vector.broadcast %153 : vector<1x32xf32> to vector<16x32xf32>
    %155 = arith.addf %150, %154 : vector<16x32xf32>
    %c0_54 = arith.constant 0 : index
    %c0_55 = arith.constant 0 : index
    %c0_56 = arith.constant 0 : index
    %156 = vector.load %arg8[%c0_54, %c0_55, %c0_56] : memref<1x1x32xf32, #tpu.memory_space<vmem>>, vector<1x1x32xf32>
    %157 = vector.shape_cast %156 : vector<1x1x32xf32> to vector<32xf32>
    %c0_57 = arith.constant 0 : index
    %c0_58 = arith.constant 0 : index
    %c0_59 = arith.constant 0 : index
    %158 = vector.load %arg9[%c0_57, %c0_58, %c0_59] : memref<1x1x32xf32, #tpu.memory_space<vmem>>, vector<1x1x32xf32>
    %159 = vector.shape_cast %158 : vector<1x1x32xf32> to vector<32xf32>
    %cst_60 = arith.constant dense<0.000000e+00> : vector<16xf32>
    %160 = vector.multi_reduction <add>, %155, %cst_60 [1] : vector<16x32xf32> to vector<16xf32>
    %161 = vector.shape_cast %160 : vector<16xf32> to vector<16x1xf32>
    %cst_61 = arith.constant 3.200000e+01 : f32
    %162 = vector.broadcast %cst_61 : f32 to vector<16x1xf32>
    %163 = arith.divf %161, %162 : vector<16x1xf32>
    %164 = vector.broadcast %163 : vector<16x1xf32> to vector<16x32xf32>
    %165 = arith.subf %155, %164 : vector<16x32xf32>
    %166 = arith.mulf %165, %165 : vector<16x32xf32>
    %cst_62 = arith.constant dense<0.000000e+00> : vector<16xf32>
    %167 = vector.multi_reduction <add>, %166, %cst_62 [1] : vector<16x32xf32> to vector<16xf32>
    %168 = vector.shape_cast %167 : vector<16xf32> to vector<16x1xf32>
    %cst_63 = arith.constant 3.200000e+01 : f32
    %169 = vector.broadcast %cst_63 : f32 to vector<16x1xf32>
    %170 = arith.divf %168, %169 : vector<16x1xf32>
    %171 = vector.broadcast %163 : vector<16x1xf32> to vector<16x32xf32>
    %172 = arith.subf %155, %171 : vector<16x32xf32>
    %cst_64 = arith.constant 9.99999974E-6 : f32
    %173 = vector.broadcast %cst_64 : f32 to vector<16x1xf32>
    %174 = arith.addf %170, %173 : vector<16x1xf32>
    %175 = math.rsqrt %174 : vector<16x1xf32>
    %176 = vector.broadcast %175 : vector<16x1xf32> to vector<16x32xf32>
    %177 = arith.mulf %172, %176 : vector<16x32xf32>
    %178 = vector.shape_cast %157 : vector<32xf32> to vector<1x32xf32>
    %179 = vector.broadcast %178 : vector<1x32xf32> to vector<16x32xf32>
    %180 = arith.mulf %177, %179 : vector<16x32xf32>
    %181 = vector.shape_cast %159 : vector<32xf32> to vector<1x32xf32>
    %182 = vector.broadcast %181 : vector<1x32xf32> to vector<16x32xf32>
    %183 = arith.addf %180, %182 : vector<16x32xf32>
    %184 = arith.truncf %183 : vector<16x32xf32> to vector<16x32xbf16>
    %c0_65 = arith.constant 0 : index
    %c0_66 = arith.constant 0 : index
    %c0_67 = arith.constant 0 : index
    %185 = vector.load %arg10[%c0_65, %c0_66, %c0_67] : memref<1x32x64xbf16, #tpu.memory_space<vmem>>, vector<1x32x64xbf16>
    %186 = vector.shape_cast %185 : vector<1x32x64xbf16> to vector<32x64xbf16>
    %cst_68 = arith.constant dense<0.000000e+00> : vector<16x64xf32>
    %187 = tpu.matmul %184, %186, %cst_68 {dimension_numbers = #tpu.dot_dimension_numbers<[1], [0], [0], [1], [0, 0, 1, 1], [], []>} : vector<16x32xbf16>, vector<32x64xbf16>, vector<16x64xf32> -> vector<16x64xf32>
    %c0_69 = arith.constant 0 : index
    %c0_70 = arith.constant 0 : index
    %c0_71 = arith.constant 0 : index
    %188 = vector.load %arg11[%c0_69, %c0_70, %c0_71] : memref<1x1x64xf32, #tpu.memory_space<vmem>>, vector<1x1x64xf32>
    %189 = vector.shape_cast %188 : vector<1x1x64xf32> to vector<64xf32>
    %190 = vector.shape_cast %189 : vector<64xf32> to vector<1x64xf32>
    %191 = vector.broadcast %190 : vector<1x64xf32> to vector<16x64xf32>
    %192 = arith.addf %187, %191 : vector<16x64xf32>
    %cst_72 = arith.constant 2.000000e+01 : f32
    %193 = vector.broadcast %cst_72 : f32 to vector<16x64xf32>
    %194 = arith.minimumf %192, %193 : vector<16x64xf32>
    %195 = math.exp %194 : vector<16x64xf32>
    %cst_73 = arith.constant 1.000000e+00 : f32
    %196 = vector.broadcast %cst_73 : f32 to vector<16x64xf32>
    %197 = arith.addf %196, %195 : vector<16x64xf32>
    %cst_74 = arith.constant 1.000000e+00 : f32
    %198 = vector.broadcast %cst_74 : f32 to vector<16x64xf32>
    %199 = arith.addf %198, %195 : vector<16x64xf32>
    %200 = arith.mulf %197, %199 : vector<16x64xf32>
    %cst_75 = arith.constant 1.000000e+00 : f32
    %201 = vector.broadcast %cst_75 : f32 to vector<16x64xf32>
    %202 = arith.subf %200, %201 : vector<16x64xf32>
    %203 = arith.mulf %192, %202 : vector<16x64xf32>
    %cst_76 = arith.constant 1.000000e+00 : f32
    %204 = vector.broadcast %cst_76 : f32 to vector<16x64xf32>
    %205 = arith.addf %200, %204 : vector<16x64xf32>
    %206 = tpu.reciprocal %205 {approx = true} : vector<16x64xf32> -> vector<16x64xf32>
    %207 = arith.mulf %203, %206 : vector<16x64xf32>
    %208 = arith.truncf %207 : vector<16x64xf32> to vector<16x64xbf16>
    %c0_77 = arith.constant 0 : index
    %c0_78 = arith.constant 0 : index
    %c0_79 = arith.constant 0 : index
    %209 = vector.load %arg12[%c0_77, %c0_78, %c0_79] : memref<1x64x32xbf16, #tpu.memory_space<vmem>>, vector<1x64x32xbf16>
    %210 = vector.shape_cast %209 : vector<1x64x32xbf16> to vector<64x32xbf16>
    %cst_80 = arith.constant dense<0.000000e+00> : vector<16x32xf32>
    %211 = tpu.matmul %208, %210, %cst_80 {dimension_numbers = #tpu.dot_dimension_numbers<[1], [0], [0], [1], [0, 0, 1, 1], [], []>} : vector<16x64xbf16>, vector<64x32xbf16>, vector<16x32xf32> -> vector<16x32xf32>
    %c0_81 = arith.constant 0 : index
    %c0_82 = arith.constant 0 : index
    %c0_83 = arith.constant 0 : index
    %212 = vector.load %arg13[%c0_81, %c0_82, %c0_83] : memref<1x1x32xf32, #tpu.memory_space<vmem>>, vector<1x1x32xf32>
    %213 = vector.shape_cast %212 : vector<1x1x32xf32> to vector<32xf32>
    %214 = vector.shape_cast %213 : vector<32xf32> to vector<1x32xf32>
    %215 = vector.broadcast %214 : vector<1x32xf32> to vector<16x32xf32>
    %216 = arith.addf %211, %215 : vector<16x32xf32>
    %217 = arith.addf %155, %216 : vector<16x32xf32>
    %218 = vector.shape_cast %217 : vector<16x32xf32> to vector<2x8x32xf32>
    %c0_84 = arith.constant 0 : index
    %c0_85 = arith.constant 0 : index
    %c0_86 = arith.constant 0 : index
    %219 = vector.load %arg14[%c0_84, %c0_85, %c0_86] : memref<2x8x32xf32, #tpu.memory_space<vmem>>, vector<2x8x32xf32>
    tpu.vector_store %arg14[%c0_84, %c0_85, %c0_86], %218 {strides = array<i32>} : memref<2x8x32xf32, #tpu.memory_space<vmem>>, vector<2x8x32xf32>,
    return
  }
  func.func @transform_0(%arg0: i32, %arg1: i32) -> (i32, i32, i32) {
    %c0_i32 = arith.constant 0 : i32
    %c0_i32_0 = arith.constant 0 : i32
    %c0_i32_1 = arith.constant 0 : i32
    return %arg0, %c0_i32, %c0_i32_0 : i32, i32, i32
  }
  func.func @transform_1(%arg0: i32, %arg1: i32) -> (i32, i32, i32) {
    %c0_i32 = arith.constant 0 : i32
    %c0_i32_0 = arith.constant 0 : i32
    %c0_i32_1 = arith.constant 0 : i32
    return %arg1, %c0_i32, %c0_i32_0 : i32, i32, i32
  }
  func.func @transform_2(%arg0: i32, %arg1: i32) -> (i32, i32, i32) {
    %c0_i32 = arith.constant 0 : i32
    %c0_i32_0 = arith.constant 0 : i32
    %c0_i32_1 = arith.constant 0 : i32
    return %arg1, %c0_i32, %c0_i32_0 : i32, i32, i32
  }
  func.func @transform_3(%arg0: i32, %arg1: i32) -> (i32, i32, i32) {
    %c0_i32 = arith.constant 0 : i32
    %c0_i32_0 = arith.constant 0 : i32
    %c0_i32_1 = arith.constant 0 : i32
    return %arg1, %c0_i32, %c0_i32_0 : i32, i32, i32
  }
  func.func @transform_4(%arg0: i32, %arg1: i32) -> (i32, i32, i32, i32) {
    %c0_i32 = arith.constant 0 : i32
    %c0_i32_0 = arith.constant 0 : i32
    %c0_i32_1 = arith.constant 0 : i32
    %c0_i32_2 = arith.constant 0 : i32
    return %arg1, %c0_i32, %c0_i32_0, %c0_i32_1 : i32, i32, i32, i32
  }
  func.func @transform_5(%arg0: i32, %arg1: i32) -> (i32, i32, i32) {
    %c0_i32 = arith.constant 0 : i32
    %c0_i32_0 = arith.constant 0 : i32
    %c0_i32_1 = arith.constant 0 : i32
    return %arg1, %c0_i32, %c0_i32_0 : i32, i32, i32
  }
  func.func @transform_6(%arg0: i32, %arg1: i32) -> (i32, i32, i32) {
    %c0_i32 = arith.constant 0 : i32
    %c0_i32_0 = arith.constant 0 : i32
    %c0_i32_1 = arith.constant 0 : i32
    return %arg1, %c0_i32, %c0_i32_0 : i32, i32, i32
  }
  func.func @transform_7(%arg0: i32, %arg1: i32) -> (i32, i32, i32) {
    %c0_i32 = arith.constant 0 : i32
    %c0_i32_0 = arith.constant 0 : i32
    %c0_i32_1 = arith.constant 0 : i32
    return %arg1, %c0_i32, %c0_i32_0 : i32, i32, i32
  }
  func.func @transform_8(%arg0: i32, %arg1: i32) -> (i32, i32, i32) {
    %c0_i32 = arith.constant 0 : i32
    %c0_i32_0 = arith.constant 0 : i32
    %c0_i32_1 = arith.constant 0 : i32
    return %arg1, %c0_i32, %c0_i32_0 : i32, i32, i32
  }
  func.func @transform_9(%arg0: i32, %arg1: i32) -> (i32, i32, i32) {
    %c0_i32 = arith.constant 0 : i32
    %c0_i32_0 = arith.constant 0 : i32
    %c0_i32_1 = arith.constant 0 : i32
    return %arg1, %c0_i32, %c0_i32_0 : i32, i32, i32
  }
  func.func @transform_10(%arg0: i32, %arg1: i32) -> (i32, i32, i32) {
    %c0_i32 = arith.constant 0 : i32
    %c0_i32_0 = arith.constant 0 : i32
    %c0_i32_1 = arith.constant 0 : i32
    return %arg1, %c0_i32, %c0_i32_0 : i32, i32, i32
  }
  func.func @transform_11(%arg0: i32, %arg1: i32) -> (i32, i32, i32) {
    %c0_i32 = arith.constant 0 : i32
    %c0_i32_0 = arith.constant 0 : i32
    %c0_i32_1 = arith.constant 0 : i32
    return %arg1, %c0_i32, %c0_i32_0 : i32, i32, i32
  }
  func.func @transform_12(%arg0: i32, %arg1: i32) -> (i32, i32, i32) {
    %c0_i32 = arith.constant 0 : i32
    %c0_i32_0 = arith.constant 0 : i32
    %c0_i32_1 = arith.constant 0 : i32
    return %arg0, %c0_i32, %c0_i32_0 : i32, i32, i32
  }
}

</mosaic_0001>

<bundles_post_ra>
// kernel: tpu_custom_call.1
= control target key start
LH: loop header
LB: loop body
LE: loop exit
PB: predicated region body
PF: predicated region fallthrough
CT: control target
= control target key end

     0   :  { %s3785_s0 = inlined_call_operand.hbm [shape: f32[2,8,32], index: 0, kind: input, shape index: {}]   ;;  %s3786_s1 = inlined_call_operand.vmem [shape: f32[2,1,32], index: 1, kind: input, shape index: {}]   ;;  %s3787_s2 = inlined_call_operand.vmem [shape: f32[2,1,32], index: 2, kind: input, shape index: {}]   ;;  %s3788_s3 = inlined_call_operand.vmem [shape: bf16[2,32,192], index: 3, kind: input, shape index: {}]   ;;  %s3789_s4 = inlined_call_operand.hbm [shape: bf16[2,4,16,32], index: 4, kind: input, shape index: {}]   ;;  %s3790_s5 = inlined_call_operand.hbm [shape: f32[2,1,32], index: 5, kind: input, shape index: {}]   ;;  %s3791_s6 = inlined_call_operand.hbm [shape: f32[2,1,32], index: 6, kind: input, shape index: {}]   ;;  %s3792_s7 = inlined_call_operand.hbm [shape: f32[2,1,32], index: 7, kind: input, shape index: {}]   ;;  %s3793_s8 = inlined_call_operand.vmem [shape: bf16[2,32,64], index: 8, kind: input, shape index: {}]   ;;  %s3794_s9 = inlined_call_operand.hbm [shape: f32[2,1,64], index: 9, kind: input, shape index: {}]   ;;  %s3795_s10 = inlined_call_operand.vmem [shape: bf16[2,64,32], index: 10, kind: input, shape index: {}]   ;;  %s3796_s11 = inlined_call_operand.vmem [shape: f32[2,1,32], index: 11, kind: input, shape index: {}]   ;;  %s3797_s12 = inlined_call_operand.hbm [shape: f32[2,8,32], index: 12, kind: output, shape index: {}]  }
   0x1   :  { %3810 = sst [smem:[#allocation24_spill]] %s3788_s3 }
   0x2   :  { %3811 = sst [smem:[#allocation25_spill]] %s3789_s4 }
   0x3   :  { %3812 = sst [smem:[#allocation26_spill]] %s3791_s6 }
   0x4   :  { %3813 = sst [smem:[#allocation27_spill]] %s3793_s8 }
   0x5   :  { %3814 = sst [smem:[#allocation28_spill]] %s3795_s10 }
   0x6   :  { %3815 = sst [smem:[#allocation29_spill]] %s3796_s11 }
   0x7   :  { %3816 = sst [smem:[#allocation30_spill]] %s3797_s12 }
   0x8   :  { %17 = vsyncpa [#allocation3], 0 }
   0x9   :  { %18 = vsyncpa [#allocation6], 0 }
   0xa   :  { %20 = vsyncpa [#allocation6 + $0x1], 0 }
   0xb   :  { %21 = vsyncpa [#allocation9], 0 }
   0xc   :  { %23 = vsyncpa [#allocation9 + $0x1], 0 }
   0xd   :  { %24 = vsyncpa [#allocation12], 0 }
   0xe   :  { %26 = vsyncpa [#allocation12 + $0x1], 0 }
   0xf   :  { %27 = vsyncpa [#allocation4], 0  ;;  %s3183_s21 = smov 0   ;;  %s3185_s22 = smov 0  }
  0x10   :  { %s3187_s23 = smov 0   ;;  %s3189_s24 = smov 0  }
  0x11   :  { %s3191_s25 = smov 0   ;;  %s3193_s26 = smov 0  }
  0x12 LB: > { %3817 = sst [smem:[#allocation19_spill]] %s3081_s23  ;;  %s42_s27 = sadd.s32 1, %s3089_s25  ;;  %s3093_s26 = sphi %s3193_s26, %s33_s26   ;;  %s3089_s25 = sphi %s3191_s25, %s3856_s25   ;;  %s3085_s24 = sphi %s3189_s24, %s3855_s24   ;;  %s3081_s23 = sphi %s3187_s23, %s3854_s23   ;;  %s3077_s22 = sphi %s3185_s22, %s3858_s22   ;;  %s3073_s21 = sphi %s3183_s21, %s3857_s21  }
  0x13   : > { %3818 = sst [smem:[#allocation20_spill]] %s3089_s25  ;;  %s156_s28 = sadd.s32 1, %s3081_s23 }
  0x14   : > { %3819 = sst [smem:[#allocation21_spill]] %s3093_s26  ;;  %p43_p0 = scmp.ge.s32.totalorder %s42_s27, 2 }
  0x15   : > { %p163_p1 = scmp.ne.s32.totalorder %s3081_s23, %s3077_s22  ;;  %p164_p2 = scmp.eq.s32.totalorder %s3093_s26, 0 }
  0x16   : > { %s3860_s27 = smov (%p43_p0, %s42_s27), 0  ;;  %p2689_p4 = scmp.lt.s32.totalorder %s3093_s26, 2 }
  0x17   : > { %3820 = sst [smem:[#allocation22_spill]] %s3860_s27  ;;  %p165_p3 = por %p164_p2, %p163_p1 }
  0x18   : > { %s153_s29 = ssub.s32 %s3089_s25, %s3860_s27  ;;  %s3225_s13 = sand.u32 1, %s3081_s23  }
  0x19   : > { %p154_p5 = scmp.eq.s32.totalorder %s153_s29, 0  ;;  %s2458_s14 = sshll.u32 %s3089_s25, 9 }
  0x1a   : > { %s2385_s16 = sshll.u32 %s3225_s13, 5  ;;  %s3822_s4 = sld [smem:[#allocation25_spill]] }
  0x1b   : > { %s3229_s15 = scalar_select %p154_p5, %s3081_s23, %s156_s28  }
  0x1c   : > { %p3237_p6 = pnand %p2689_p4, %p165_p3  ;;  %s441_s29 = scalar_lea.vmem [#allocation5], %s2385_s16 }
  0x1d   : > { %3821 = sst [smem:[#allocation23_spill]] %s3229_s15  ;;  %s448_s30 = sshll.u32 %s441_s29, 4  ;;  %s3241_s30 = int_to_ptr.vmem [resolvable:$true] %s448_s30 }
  0x1e   : > { %s3823_s20 = scalar_select %p3237_p6, 1, 0 }
  0x1f   : > { %s3244_s28 = sshll.u32 %s3089_s25, 4  ;;  %s3824_s27 = sand.u32 1, %s3093_s26  }
  0x20   : > { %s3235_s19 = scalar_lea.hbm %s3822_s4, %s2458_s14  ;;  %s3248_s15 = scalar_lea.sflag [#allocation6], %s3824_s27 }
  0x21   : > { %s2823_s14 = scalar_lea.hbm %s3235_s19, 512  ;;  %p3254_p8 = pneg %p3237_p6 }
  0x22   : > { %p2824_p7 = scmp.ne.s32.totalorder %s3235_s19, %s2823_s14  ;;  %s2828_s29 = scalar_lea.hbm %s3822_s4, 1024 }
  0x23   : > { %s3825_s17 = scalar_select %p3254_p8, 1, 0 }
  0x24   : > { %p2826_p9 = pnand %p3254_p8, %p2824_p7  ;;  %p2829_p11 = scmp.lt.u32.totalorder %s3235_s19, %s3822_s4 }
  0x25   : > { %p2830_p12 = scmp.lt.u32.totalorder %s2828_s29, %s2823_s14  ;;  %p2832_p0 = scmp.lt.u32.totalorder %s2823_s14, %s3235_s19 }
  0x26   : > { %p2827_p10 = pneg %p2826_p9 }
  0x27   : > { %p2831_p13 = por %p2830_p12, %p2829_p11 }
  0x29   : > { %p2833_p1 = por %p2832_p0, %p2831_p13 }
  0x2b   : > { %p2834_p2 = pnand %p2833_p1, %p2827_p10 }
  0x2d   : > { %2837 = shalt.err (!%p2834_p2)
}
  0x2e   : > { %s2838_s27 = scalar_lea.vmem %s3241_s30, 512  ;;  %s3095_s16 = smov [#allocation5]  }
  0x2f   : > { %p2839_p3 = scmp.ne.s32.totalorder %s3241_s30, %s2838_s27  ;;  %s2843_s18 = sshll.u32 %s3095_s16, 4  ;;  %s2844_s18 = int_to_ptr.vmem [resolvable:$false] %s2843_s18 }
  0x30   : > { %s2845_s23 = scalar_lea.vmem %s2844_s18, 1024  ;;  %p2846_p7 = scmp.lt.s32.totalorder %s3241_s30, %s2844_s18 }
  0x31   : > { %p2841_p4 = pnand %p2839_p3, %p3254_p8  ;;  %p2847_p9 = scmp.lt.s32.totalorder %s2845_s23, %s2838_s27 }
  0x33   : > { %p2842_p5 = pneg %p2841_p4  ;;  %p2848_p11 = por %p2847_p9, %p2846_p7 }
  0x35   : > { %p2849_p12 = pnand %p2848_p11, %p2842_p5 }
  0x37   : > { %2852 = shalt.err (!%p2849_p12)
}
  0x38   : > { %s3096_s25 = smov 64   ;;  %s3097_s14 = smov 4  }
  0x39   : > { %2675 = dma.hbm_to_vmem [thread:$0]  (!%p3237_p6), %s3235_s19, 512, %s3241_s30, %s3248_s15, %s3096_s25, %s3096_s25, %s3097_s14  }
  0x3a   : > { %s3826_s6 = sld [smem:[#allocation26_spill]]  ;;  %s478_s27 = scalar_lea.vmem [#allocation8], %s3225_s13 }
  0x3b   : > { %s485_s23 = sshll.u32 %s478_s27, 4  ;;  %s3827_s4 = sand.u32 1, %s3093_s26   ;;  %s486_s23 = int_to_ptr.vmem [resolvable:$true] %s485_s23 }
  0x3c   : > { %s3287_s12 = scalar_lea.sflag [#allocation9], %s3827_s4 }
  0x40   : > { %s3282_s18 = scalar_lea.hbm %s3826_s6, %s3244_s28  ;;  %s2858_s25 = scalar_lea.hbm %s3826_s6, 32 }
  0x41   : > { %s2853_s11 = scalar_lea.hbm %s3282_s18, 16  ;;  %p2859_p1 = scmp.lt.u32.totalorder %s3282_s18, %s3826_s6 }
  0x42   : > { %p2854_p10 = scmp.ne.s32.totalorder %s3282_s18, %s2853_s11  ;;  %p2860_p2 = scmp.lt.u32.totalorder %s2858_s25, %s2853_s11 }
  0x43   : > { %p2862_p4 = scmp.lt.u32.totalorder %s2853_s11, %s3282_s18 }
  0x44   : > { %p2856_p13 = pnand %p2854_p10, %p3254_p8  ;;  %p2861_p3 = por %p2860_p2, %p2859_p1 }
  0x46   : > { %p2857_p0 = pneg %p2856_p13  ;;  %p2863_p5 = por %p2862_p4, %p2861_p3 }
  0x48   : > { %p2864_p7 = pnand %p2863_p5, %p2857_p0 }
  0x4a   : > { %2867 = shalt.err (!%p2864_p7)
}
  0x4b   : > { %s2868_s4 = scalar_lea.vmem %s486_s23, 16  ;;  %s3098_s16 = smov [#allocation8]  }
  0x4c   : > { %p2869_p9 = scmp.ne.s32.totalorder %s486_s23, %s2868_s4  ;;  %s2873_s27 = sshll.u32 %s3098_s16, 4  ;;  %s2874_s27 = int_to_ptr.vmem [resolvable:$false] %s2873_s27 }
  0x4d   : > { %s2875_s30 = scalar_lea.vmem %s2874_s27, 32  ;;  %p2876_p10 = scmp.lt.s32.totalorder %s486_s23, %s2874_s27 }
  0x4e   : > { %p2871_p11 = pnand %p2869_p9, %p3254_p8  ;;  %p2877_p13 = scmp.lt.s32.totalorder %s2875_s30, %s2868_s4 }
  0x50   : > { %p2872_p12 = pneg %p2871_p11  ;;  %p2878_p6 = por %p2877_p13, %p2876_p10 }
  0x52   : > { %p2879_p1 = pnand %p2878_p6, %p2872_p12 }
  0x54   : > { %2882 = shalt.err (!%p2879_p1)
}
  0x55   : > { %p3828_p2 = scmp.ne.s32.totalorder %s3823_s20, 0  ;;  %s3308_s11 = sadd.s32 4294967295, %s3093_s26  }
  0x56   : > { %p169_p0 = scmp.ne.s32.totalorder %s3077_s22, %s3073_s21  ;;  %p3805_p6 = scmp.eq.s32.totalorder %s3308_s11, 0 }
  0x57   : > { %2681 = dma.hbm_to_vmem [thread:$0]  (!%p3828_p2), %s3282_s18, 16, %s486_s23, %s3287_s12  }
  0x58   : > { %p2382_p3 = scmp.ge.s32.totalorder %s3093_s26, 1  ;;  %p388_p4 = scmp.lt.s32.totalorder %s3093_s26, 3 }
  0x59   : > { %p3317_p5 = por %p3805_p6, %p169_p0  ;;  %s3099_s18 = smov [#allocation2]  }
  0x5a   : > { %p3321_p7 = pnand %p2382_p3, %p388_p4  ;;  %s403_s23 = sshll.u32 %s3099_s18, 4  ;;  %s404_s23 = int_to_ptr.vmem [resolvable:$true] %s403_s23 }
  0x5b   : > { %s3829_s19 = scalar_select %p3317_p5, 1, 0 }
  0x5c   : > { %s3830_s25 = scalar_select %p3321_p7, 1, 0 }
  0x5d   : > { %p2668_p9 = pneg %p3321_p7  ;;  %s3337_s4 = scalar_lea.hbm %s3790_s5, %s3244_s28 }
  0x5e   : > { %s461_s16 = scalar_lea.vmem [#allocation7], %s3225_s13  ;;  %s2883_s6 = scalar_lea.hbm %s3785_s0, 256 }
  0x5f   : > { %p3329_p11 = pnand %p2668_p9, %p3805_p6  ;;  %s468_s27 = sshll.u32 %s461_s16, 4  ;;  %s3340_s27 = int_to_ptr.vmem [resolvable:$true] %s468_s27 }
  0x60   : > { %p2884_p12 = scmp.ne.s32.totalorder %s3785_s0, %s2883_s6  ;;  %p2890_p0 = scmp.lt.u32.totalorder %s2883_s6, %s3785_s0 }
  0x61   : > { %p2885_p10 = pneg %p3329_p11 }
  0x63   : > { %p2886_p13 = pnand %p2885_p10, %p2884_p12 }
  0x65   : > { %p2887_p1 = pneg %p2886_p13 }
  0x67   : > { %p2892_p3 = pnand %p2890_p0, %p2887_p1 }
  0x69   : > { %2895 = shalt.err (!%p2892_p3)
}
  0x6a   : > { %s2896_s16 = scalar_lea.vmem %s404_s23, 256  ;;  %p2904_p5 = scmp.lt.s32.totalorder %s404_s23, %s404_s23 }
  0x6b   : > { %p2897_p4 = scmp.ne.s32.totalorder %s404_s23, %s2896_s16  ;;  %p2905_p7 = scmp.lt.s32.totalorder %s2896_s16, %s2896_s16 }
  0x6d   : > { %p2899_p9 = pnand %p2897_p4, %p2885_p10  ;;  %p2906_p2 = por %p2905_p7, %p2904_p5 }
  0x6f   : > { %p2900_p6 = pneg %p2899_p9 }
  0x71   : > { %p2907_p8 = pnand %p2906_p2, %p2900_p6 }
  0x73   : > { %2910 = shalt.err (!%p2907_p8)
}
  0x74   : > { %s3100_s10 = smov 128   ;;  %s3101_s26 = smov 8  }
  0x75   : > { %2671 = dma.hbm_to_vmem [thread:$0]  (!%p3329_p11), %s3785_s0, 256, %s404_s23, [#allocation3], %s3100_s10, %s3100_s10, %s3101_s26  }
  0x76   : > { %s2911_s18 = scalar_lea.hbm %s3337_s4, 16  ;;  %p3832_p10 = scmp.ne.s32.totalorder %s3825_s17, 0 }
  0x77   : > { %p2912_p12 = scmp.ne.s32.totalorder %s3337_s4, %s2911_s18  ;;  %s2916_s16 = scalar_lea.hbm %s3790_s5, 32 }
  0x78   : > { %p2917_p8 = scmp.lt.u32.totalorder %s3337_s4, %s3790_s5  ;;  %p2918_p2 = scmp.lt.u32.totalorder %s2916_s16, %s2911_s18 }
  0x79   : > { %p2914_p13 = pnand %p2912_p12, %p3832_p10  ;;  %p2920_p7 = scmp.lt.u32.totalorder %s2911_s18, %s3337_s4 }
  0x7a   : > { %p2919_p6 = por %p2918_p2, %p2917_p8 }
  0x7b   : > { %p2915_p5 = pneg %p2914_p13 }
  0x7c   : > { %p2921_p1 = por %p2920_p7, %p2919_p6 }
  0x7e   : > { %p2922_p0 = pnand %p2921_p1, %p2915_p5 }
  0x80   : > { %2925 = shalt.err (!%p2922_p0)
}
  0x81   : > { %s2926_s23 = scalar_lea.vmem %s3340_s27, 16  ;;  %s3102_s21 = smov [#allocation7]  }
  0x82   : > { %p2927_p11 = scmp.ne.s32.totalorder %s3340_s27, %s2926_s23  ;;  %s2931_s10 = sshll.u32 %s3102_s21, 4  ;;  %s2932_s10 = int_to_ptr.vmem [resolvable:$false] %s2931_s10 }
  0x83   : > { %s2933_s3 = scalar_lea.vmem %s2932_s10, 32  ;;  %p2934_p9 = scmp.lt.s32.totalorder %s3340_s27, %s2932_s10 }
  0x84   : > { %p2929_p3 = pnand %p2927_p11, %p3832_p10  ;;  %p2935_p12 = scmp.lt.s32.totalorder %s2933_s3, %s2926_s23 }
  0x86   : > { %p2930_p4 = pneg %p2929_p3  ;;  %p2936_p13 = por %p2935_p12, %p2934_p9 }
  0x88   : > { %p2937_p8 = pnand %p2936_p13, %p2930_p4 }
  0x8a   : > { %2940 = shalt.err (!%p2937_p8)
}
  0x8b   : > { %p3833_p5 = scmp.ne.s32.totalorder %s3823_s20, 0  ;;  %s3384_s6 = scalar_lea.hbm %s3792_s7, %s3244_s28 }
  0x8c   : > { %s495_s30 = scalar_lea.vmem [#allocation10], %s3225_s13  ;;  %s2941_s14 = scalar_lea.hbm %s3384_s6, 16 }
  0x8d   : > { %2678 = dma.hbm_to_vmem [thread:$0]  (!%p3833_p5), %s3337_s4, 16, %s3340_s27, %s3248_s15  }
  0x8e   : > { %s502_s18 = sshll.u32 %s495_s30, 4  ;;  %p2942_p2 = scmp.ne.s32.totalorder %s3384_s6, %s2941_s14  ;;  %s503_s18 = int_to_ptr.vmem [resolvable:$true] %s502_s18 }
  0x8f   : > { %s2946_s15 = scalar_lea.hbm %s3792_s7, 32  ;;  %p2947_p1 = scmp.lt.u32.totalorder %s3384_s6, %s3792_s7 }
  0x90   : > { %p2944_p6 = pnand %p2942_p2, %p3832_p10  ;;  %p2948_p0 = scmp.lt.u32.totalorder %s2946_s15, %s2941_s14 }
  0x91   : > { %p2950_p3 = scmp.lt.u32.totalorder %s2941_s14, %s3384_s6 }
  0x92   : > { %p2945_p7 = pneg %p2944_p6  ;;  %p2949_p11 = por %p2948_p0, %p2947_p1 }
  0x94   : > { %p2951_p4 = por %p2950_p3, %p2949_p11 }
  0x96   : > { %p2952_p9 = pnand %p2951_p4, %p2945_p7 }
  0x98   : > { %2955 = shalt.err (!%p2952_p9)
}
  0x99   : > { %s2956_s23 = scalar_lea.vmem %s503_s18, 16  ;;  %s3103_s21 = smov [#allocation10]  }
  0x9a   : > { %p2957_p12 = scmp.ne.s32.totalorder %s503_s18, %s2956_s23  ;;  %s2961_s10 = sshll.u32 %s3103_s21, 4  ;;  %s2962_s10 = int_to_ptr.vmem [resolvable:$false] %s2961_s10 }
  0x9b   : > { %s2963_s3 = scalar_lea.vmem %s2962_s10, 32  ;;  %p2964_p2 = scmp.lt.s32.totalorder %s503_s18, %s2962_s10 }
  0x9c   : > { %p2959_p13 = pnand %p2957_p12, %p3832_p10  ;;  %p2965_p6 = scmp.lt.s32.totalorder %s2963_s3, %s2956_s23 }
  0x9e   : > { %p2960_p8 = pneg %p2959_p13  ;;  %p2966_p5 = por %p2965_p6, %p2964_p2 }
  0xa0   : > { %p2967_p0 = pnand %p2966_p5, %p2960_p8 }
  0xa2   : > { %2970 = shalt.err (!%p2967_p0)
}
  0xa3   : > { %p3834_p1 = scmp.ne.s32.totalorder %s3823_s20, 0  ;;  %s3409_s30 = scalar_lea.hbm %s3794_s9, %s3244_s28 }
  0xa4   : > { %s520_s14 = scalar_lea.vmem [#allocation11], %s3225_s13  ;;  %s518_s16 = scalar_lea.sflag [#allocation12], %s3225_s13 }
  0xa5   : > { %2684 = dma.hbm_to_vmem [thread:$0]  (!%p3834_p1), %s3384_s6, 16, %s503_s18, %s3287_s12  }
  0xa6   : > { %s527_s29 = sshll.u32 %s520_s14, 4  ;;  %s2971_s15 = scalar_lea.hbm %s3409_s30, 16  ;;  %s528_s29 = int_to_ptr.vmem [resolvable:$true] %s527_s29 }
  0xa7   : > { %p2972_p5 = scmp.ne.s32.totalorder %s3409_s30, %s2971_s15  ;;  %s2976_s6 = scalar_lea.hbm %s3794_s9, 32 }
  0xa8   : > { %p2977_p3 = scmp.lt.u32.totalorder %s3409_s30, %s3794_s9  ;;  %p2978_p4 = scmp.lt.u32.totalorder %s2976_s6, %s2971_s15 }
  0xa9   : > { %p2974_p7 = pnand %p2972_p5, %p3832_p10  ;;  %p2980_p12 = scmp.lt.u32.totalorder %s2971_s15, %s3409_s30 }
  0xaa   : > { %p2979_p9 = por %p2978_p4, %p2977_p3 }
  0xab   : > { %p2975_p11 = pneg %p2974_p7 }
  0xac   : > { %p2981_p13 = por %p2980_p12, %p2979_p9 }
  0xae   : > { %p2982_p8 = pnand %p2981_p13, %p2975_p11 }
  0xb0   : > { %2985 = shalt.err (!%p2982_p8)
}
  0xb1   : > { %s2986_s13 = scalar_lea.vmem %s528_s29, 16  ;;  %s3104_s27 = smov [#allocation11]  }
  0xb2   : > { %p2987_p2 = scmp.ne.s32.totalorder %s528_s29, %s2986_s13  ;;  %s2991_s23 = sshll.u32 %s3104_s27, 4  ;;  %s2992_s23 = int_to_ptr.vmem [resolvable:$false] %s2991_s23 }
  0xb3   : > { %s2993_s21 = scalar_lea.vmem %s2992_s23, 32  ;;  %p2994_p5 = scmp.lt.s32.totalorder %s528_s29, %s2992_s23 }
  0xb4   : > { %p2989_p6 = pnand %p2987_p2, %p3832_p10  ;;  %p2995_p7 = scmp.lt.s32.totalorder %s2993_s21, %s2986_s13 }
  0xb6   : > { %p2990_p0 = pneg %p2989_p6  ;;  %p2996_p1 = por %p2995_p7, %p2994_p5 }
  0xb8   : > { %p2997_p3 = pnand %p2996_p1, %p2990_p0 }
  0xba   : > { %3000 = shalt.err (!%p2997_p3)
}
  0xbb   : > { %p3835_p4 = scmp.ne.s32.totalorder %s3823_s20, 0  ;;  %p3836_p11 = scmp.ne.s32.totalorder %s3830_s25, 0 }
  0xbc   : > { %p3837_p9 = scmp.eq.s32.totalorder (!%p3836_p11), %s3308_s11, 0 }
  0xbd   : > { %2687 = dma.hbm_to_vmem [thread:$0]  (!%p3835_p4), %s3409_s30, 16, %s528_s29, %s518_s16  }
  0xbe   : > { %550 = sbr.rel (%p3836_p11) target bundleno = 4685 (0x124d), region = 68 }
  0xc5   : > { %3052 = dma.done.wait (%p3837_p9), [#allocation3], 256   ;;  %p3838_p10 = pmov %p3837_p9 }
  0xc6   : > { %s556_s17 = sand.u32 1, %s3308_s11   ;;  %s3438_s10 = sand.u32 1, %s3077_s22  }
  0xc7   : > { %3054 = vsyncadd (%p3838_p10), [#allocation3], 4294967040  ;;  %s2394_s3 = sshll.u32 %s3438_s10, 5  ;;  %s557_s20 = scalar_lea.sflag [#allocation6], %s556_s17 }
  0xc8   : > { %s3441_s8 = scalar_lea.vmem [#allocation5], %s2394_s3  ;;  %p3839_p1 = scmp.ne.s32.totalorder %s3829_s19, 0 }
  0xca   : > { %3056 = dma.done.wait (%p3839_p1), %s557_s20, 528  }
  0xcb   : > { %3058 = vsyncadd (%p3839_p1), %s557_s20, 4294966768  ;;  %s574_s26 = scalar_lea.sflag [#allocation9], %s556_s17 }
  0xcc   : > { %3060 = dma.done.wait (%p3839_p1), %s574_s26, 32  }
  0xcd   : > { %3062 = vsyncadd (%p3839_p1), %s574_s26, 4294967264  ;;  %s590_s29 = scalar_lea.sflag [#allocation12], %s3438_s10 }
  0xce   : > { %3064 = dma.done.wait (%p3839_p1), %s590_s29, 16  }
  0xcf   : > { %3066 = vsyncadd (%p3839_p1), %s590_s29, 4294967280  ;;  %p669_p12 = scmp.lt.s32.totalorder %s3085_s24, 1  ;;  %s3840_s17 = sld [smem:[#allocation24_spill]] }
  0xd0   : > { %s3841_s29 = sld [smem:[#allocation27_spill]]  ;;  %s3842_s14 = sld [smem:[#allocation28_spill]] }
  0xd1   : > { %s3462_s15 = scalar_select %p669_p12, %s3085_s24, 1 }
  0xd2   : > { %s3843_s28 = sld [smem:[#allocation29_spill]]  ;;  %p2401_p13 = scmp.ne.s32.totalorder %s3085_s24, 0 }
  0xd3   : > { %s671_s6 = scalar_lea.vmem %s3786_s1, %s3462_s15  ;;  %s2459_s19 = sshll.u32 %s3462_s15, 5  ;;  %v699_v0 = vld [vmem:[#allocation2] sm:$0xff] (!%p2401_p13)  ;;  %vm701_vm0 = vcmask (!%p2401_p13), 261120   ;;  %v700_v1 = vld [vmem:[#allocation2 + $0x8] sm:$0xff] (!%p2401_p13) }
  0xd4   : > { %s2460_s27 = sshll.u32 %s3462_s15, 4  ;;  %698 = sbr.rel (%p2401_p13) target bundleno = 219 (0xdb), region = 96  ;;  %702 = vst.msk [vmem:[#allocation13] sm:$0xff] (!%p2401_p13), %vm701_vm0, %v699_v0  ;;  %703 = vst.msk [vmem:[#allocation13 + $0x8] sm:$0xff] (!%p2401_p13), %vm701_vm0, %v700_v1 }
  0xd5   : > { %s3477_s3 = scalar_lea.vmem %s3840_s17, %s2459_s19 }
  0xd6   : > { %s3482_s4 = scalar_lea.vmem %s3841_s29, %s2460_s27  ;;  %s3487_s30 = scalar_lea.vmem %s3842_s14, %s2459_s19 }
  0xd8   : > { %s692_s13 = scalar_lea.vmem %s3843_s28, %s3462_s15 }
  0xdb PF: > { %v3494_v2 = vld [vmem:[#allocation13] sm:$0xff]  ;;  %vm708_vm1 = vcmask 261120   ;;  %v3496_v3 = vld [vmem:[#allocation13 + $0x8] sm:$0xff]  ;;  %v3105_v20 = vmov 0   ;;  %s3844_s19 = scalar_lea.vmem %s3787_s2, %s3462_s15  ;;  %v3106_v38 = vmov 0.0   ;;  %vm3107_vm2 = vmmov 0  }
  0xdc   : > { %v709_v4 = vsel %vm708_vm1, %v3494_v2, 0.0  ;;  %v712_v5 = vsel %vm708_vm1, %v3496_v3, 0.0  ;;  %v2759_v16 = vld [vmem:[%s3477_s3 + $0x4] ss:$8 sps:$4 sm:$0xff]   ;;  %v2761_v17 = vld [vmem:[%s3477_s3] ss:$8 sps:$4 sm:$0xff]   ;;  %812 = vmatprep.mubr.bf16.mxu1 %v3105_v20  ;;  %2516 = vmatprep.subr.bf16.mxu0 %v3106_v38 }
  0xdd   : > { %710 = vadd.xlane.f32.xlu0 %v709_v4  ;;  %780 = vmatprep.subr.bf16.mxu1 %v2759_v16  ;;  %v2762_v18 = vld [vmem:[%s3477_s3 + $0x14] ss:$8 sps:$4 sm:$0xff]   ;;  %v2764_v19 = vld [vmem:[%s3477_s3 + $0x10] ss:$8 sps:$4 sm:$0xff]   ;;  %v2402_v29 = vld [vmem:[%s671_s6] ss:$0 sm:$0xff] }
  0xde   : > { %781 = vmatpush1.bf16.msra.mxu1 %v2761_v17  ;;  %v2403_v33 = vld [vmem:[%s3844_s19] ss:$0 sm:$0xff]  ;;  %2518 = vmatprep.mubr.msk.bf16.mxu0 %vm3107_vm2, %v3106_v38  ;;  %s3108_s6 = smov 64   ;;  %vm830_vm3 = vcmask 130048   ;;  %vm954_vm4 = vcmask 1043456   ;;  %vm926_vm5 = vcmask 64512  }
  0xdf   : > { %782 = vmatprep.subr.bf16.mxu1 %v2762_v18  ;;  %s3109_s27 = smov 48   ;;  %s3110_s23 = smov 112   ;;  %vm2108_vm6 = vcmask 523264  }
  0xe0   : > { %s3111_s21 = smov 32   ;;  %s3112_s17 = smov 96  }
  0xe1   : > { %713 = vadd.xlane.f32.xlu0 %v712_v5  ;;  %s3113_s3 = smov 16   ;;  %s3114_s20 = smov 80  }
  0xe2   : > { %783 = vmatpush1.bf16.msra.mxu1 %v2764_v19  ;;  %s3846_s26 = scalar_lea.vmem [#allocation8], %s3438_s10  ;;  %s3847_s29 = scalar_lea.vmem [#allocation10], %s3438_s10 }
  0xe3   : > { %2510 = vmatprep.subr.bf16.mxu1 %v3106_v38  ;;  %s3115_s18 = smov [#allocation13]   ;;  %p2691_p8 = scmp.eq.s32.totalorder %s3308_s11, 1 }
  0xe4   : > { %s2166_s28 = sshll.u32 %s3115_s18, 4  ;;  %s2167_s28 = int_to_ptr.vmem [resolvable:$true] %s2166_s28 }
  0xe5   : > { %s3001_s15 = scalar_lea.vmem %s2167_s28, 256  ;;  %p3008_p5 = scmp.lt.s32.totalorder %s2167_s28, %s2167_s28 }
  0xe6   : > { %p3002_p2 = scmp.ne.s32.totalorder %s2167_s28, %s3001_s15  ;;  %p3009_p7 = scmp.lt.s32.totalorder %s3001_s15, %s3001_s15 }
  0xe8   : > { %p3003_p6 = pnand %p3002_p2, %p2691_p8  ;;  %p3010_p3 = por %p3009_p7, %p3008_p5 }
  0xea   : > { %p3004_p0 = pneg %p3003_p6 }
  0xec   : > { %p3011_p4 = pnand %p3010_p3, %p3004_p0 }
 0x16a   : > { %v711_v6 = vpop.xlane.xlu0 %710 }
 0x16b   : > { %v716_v7 = vmul.f32 0.03125, %v711_v6 }
 0x16d   : > { %v718_v8 = vsub.f32 %v3494_v2, %v716_v7 }
 0x16e   : > { %v714_v9 = vpop.xlane.xlu0 %713 }
 0x16f   : > { %v717_v10 = vmul.f32 0.03125, %v714_v9  ;;  %v720_v11 = vmul.f32 %v718_v8, %v718_v8 }
 0x171   : > { %v719_v12 = vsub.f32 %v3496_v3, %v717_v10  ;;  %v722_v13 = vsel %vm708_vm1, %v720_v11, 0.0 }
 0x172   : > { %723 = vadd.xlane.f32.xlu1 %v722_v13 }
 0x173   : > { %v721_v14 = vmul.f32 %v719_v12, %v719_v12 }
 0x175   : > { %v725_v15 = vsel %vm708_vm1, %v721_v14, 0.0 }
 0x176   : > { %726 = vadd.xlane.f32.xlu1 %v725_v15 }
 0x1ff   : > { %v724_v21 = vpop.xlane.xlu1 %723 }
 0x200   : > { %v728_v22 = vmul.f32 0.03125, %v724_v21 }
 0x202   : > { %v730_v23 = vadd.f32 1e-05, %v728_v22 }
 0x203   : > { %v727_v24 = vpop.xlane.xlu1 %726 }
 0x204   : > { %2775 = vrsqrt.f32 %v730_v23  ;;  %v729_v25 = vmul.f32 0.03125, %v727_v24 }
 0x206   : > { %v731_v26 = vadd.f32 1e-05, %v729_v25 }
 0x208   : > { %2777 = vrsqrt.f32 %v731_v26 }
 0x20e   : > { %v2776_v27 = vpop.eup %2775 }
 0x20f   : > { %v734_v28 = vmul.f32 %v2776_v27, %v718_v8 }
 0x211   : > { %v742_v32 = vmul.f32 %v2402_v29, %v734_v28 }
 0x212   : > { %v2778_v30 = vpop.eup %2777 }
 0x213   : > { %v735_v31 = vmul.f32 %v2778_v30, %v719_v12  ;;  %v750_v35 = vadd.f32 %v2403_v33, %v742_v32 }
 0x215   : > { %v743_v34 = vmul.f32 %v2402_v29, %v735_v31 }
 0x217   : > { %v751_v36 = vadd.f32 %v2403_v33, %v743_v34 }
 0x219   : > { %v752_v37 = vpack.c.bf16 %v751_v36, %v750_v35 }
 0x21b   : > { %2408 = vmatmul.mubr.msk.bf16.vlgmr.msra.gmra.mrb[0].mxu1 %vm708_vm1, %v752_v37 }
 0x21c   : > { %2512 = vmatprep.mubr.msk.bf16.mxu1 %vm3107_vm2, %v3106_v38 }
 0x2ee   : > { %v814_v39 = vpop.f32.mrb[0].mxu1 }
 0x2ef   : > { %v3527_v40 = vpack.c.bf16 %v814_v39, %v814_v39  ;;  %v816_v41 = vpop.f32.mrb[1].mxu1 }
 0x2f0   : > { %v818_v42 = vpop.f32.mrb[2].mxu1  ;;  %v3536_v49 = vpack.c.bf16 %v816_v41, %v816_v41 }
 0x2f1   : > { %v3529_v43 = vpack.c.bf16 %v818_v42, %v818_v42  ;;  %828 = vrot.lane.b32.xlu0 %v3527_v40, %s3108_s6  ;;  %v820_v44 = vpop.f32.mrb[3].mxu1 }
 0x2f2   : > { %v3539_v50 = vpack.c.bf16 %v820_v44, %v820_v44  ;;  %v956_v51 = vsel %vm954_vm4, %v3536_v49, 0 }
 0x2f3   : > { %878 = vrot.lane.b32.xlu1 %v3529_v43, %s3108_s6 }
 0x2f4   : > { %v1002_v52 = vsel %vm954_vm4, %v3539_v50, 0 }
 0x363   : > { %v829_v45 = vpop.permute.xlu0 %828 }
 0x364   : > { %v835_v46 = vsel %vm830_vm3, %v829_v45, 0 }
 0x365   : > { %2511 = vmatpush3.bf16.xpose.msra.mxu1 %v835_v46  ;;  %v879_v47 = vpop.permute.xlu1 %878 }
 0x366   : > { %v884_v48 = vsel %vm830_vm3, %v879_v47, 0  ;;  %2522 = vmatprep.subr.bf16.mxu1 %v3106_v38 }
 0x367   : > { %2517 = vmatpush3.bf16.xpose.msra.mxu0 %v884_v48 }
 0x368   : > { %2528 = vmatprep.subr.bf16.mxu0 %v3106_v38 }
 0x36c   : > { %2513 = vmatmul.mubr.msk.bf16.vlgmr.msra.gmra.mrb[4].mxu1 %vm830_vm3, %v3527_v40 }
 0x36d   : > { %2523 = vmatpush3.bf16.msra.mxu1 %v956_v51  ;;  %2524 = vmatprep.mubr.msk.bf16.mxu1 %vm3107_vm2, %v3106_v38 }
 0x36e   : > { %2519 = vmatmul.mubr.msk.bf16.vlgmr.msra.gmra.mrb[0].mxu0 %vm830_vm3, %v3529_v43  ;;  %2534 = vmatprep.subr.bf16.mxu1 %v3106_v38 }
 0x36f   : > { %2529 = vmatpush3.bf16.msra.mxu0 %v1002_v52  ;;  %2530 = vmatprep.mubr.msk.bf16.mxu0 %vm3107_vm2, %v3106_v38 }
 0x370   : > { %2540 = vmatprep.subr.bf16.mxu0 %v3106_v38 }
 0x43f   : > { %v871_v53 = vpop.f32.mrb[4].mxu1 }
 0x440   : > { %v2514_v54 = vpop.f32.mrb[5].mxu1  ;;  %v927_v55 = vsel %vm926_vm5, %v871_v53, -inf }
 0x441   : > { %v920_v56 = vpop.f32.mrb[0].mxu0  ;;  %928 = vmax.xlane.f32.xlu1 %v927_v55  ;;  %v874_v57 = vpop.f32.mrb[6].mxu1 }
 0x442   : > { %v2515_v58 = vpop.f32.mrb[7].mxu1  ;;  %v2520_v59 = vpop.f32.mrb[1].mxu0  ;;  %v930_v60 = vsel %vm926_vm5, %v920_v56, -inf }
 0x443   : > { %931 = vmax.xlane.f32.xlu0 %v930_v60  ;;  %v923_v61 = vpop.f32.mrb[2].mxu0 }
 0x444   : > { %v2521_v62 = vpop.f32.mrb[3].mxu0 }
 0x452   : > { %1099 = vrot.lane.b32.xlu1 %v3529_v43, %s3109_s27 }
 0x4ce   : > { %v929_v63 = vpop.xlane.xlu1 %928 }
 0x4cf   : > { %v933_v0 = vsub.f32 %v871_v53, %v929_v63 }
 0x4d0   : > { %v932_v1 = vpop.xlane.xlu0 %931 }
 0x4d1   : > { %v935_v4 = vmul.f32 1.442695, %v933_v0  ;;  %v934_v5 = vsub.f32 %v920_v56, %v932_v1 }
 0x4d2   : > { %v1100_v11 = vpop.permute.xlu1 %1099 }
 0x4d3   : > { %2779 = vpow2.f32 %v935_v4  ;;  %v937_v6 = vmul.f32 1.442695, %v934_v5  ;;  %v1105_v22 = vsel %vm830_vm3, %v1100_v11, 0  ;;  %v2766_v5 = vld [vmem:[%s3441_s8 + $0x8] sm:$0xff]  }
 0x4d5   : > { %2781 = vpow2.f32 %v937_v6 }
 0x4dd   : > { %v2780_v7 = vpop.eup %2779 }
 0x4de   : > { %v939_v8 = vsel %vm926_vm5, %v2780_v7, 0.0 }
 0x4df   : > { %v2782_v9 = vpop.eup %2781  ;;  %940 = vadd.xlane.f32.xlu0 %v939_v8 }
 0x4e0   : > { %v942_v10 = vsel %vm926_vm5, %v2782_v9, 0.0 }
 0x4e1   : > { %943 = vadd.xlane.f32.xlu1 %v942_v10 }
 0x4f2   : > { %1047 = vrot.lane.b32.xlu1 %v3527_v40, %s3110_s23 }
 0x4f5   : > { %1049 = vrot.lane.b32.xlu0 %v3527_v40, %s3109_s27 }
 0x4f6   : > { %1097 = vrot.lane.b32.xlu1 %v3529_v43, %s3110_s23 }
 0x56c   : > { %v941_v12 = vpop.xlane.xlu0 %940 }
 0x56d   : > { %2783 = vrcp.f32 %v941_v12 }
 0x56e   : > { %v944_v13 = vpop.xlane.xlu1 %943 }
 0x56f   : > { %2785 = vrcp.f32 %v944_v13 }
 0x570   : > { %v1050_v17 = vpop.permute.xlu0 %1049 }
 0x571   : > { %v1055_v20 = vsel %vm830_vm3, %v1050_v17, 0 }
 0x572   : > { %v1048_v23 = vpop.permute.xlu1 %1047 }
 0x576   : > { %v1098_v24 = vpop.permute.xlu1 %1097 }
 0x577   : > { %v2784_v14 = vpop.eup %2783 }
 0x578   : > { %v947_v15 = vmul.f32 %v2784_v14, %v2780_v7 }
 0x579   : > { %v2786_v16 = vpop.eup %2785 }
 0x57a   : > { %v948_v18 = vmul.f32 %v2786_v16, %v2782_v9  ;;  %v949_v19 = vpack.c.bf16 %v947_v15, %v947_v15  ;;  %v2765_v9 = vld [vmem:[%s3441_s8] sm:$0xff]  }
 0x57c   : > { %2525 = vmatmul.mubr.msk.bf16.vlgmr.msra.gmra.mrb[8].mxu1 %vm926_vm5, %v949_v19  ;;  %v950_v21 = vpack.c.bf16 %v948_v18, %v948_v18 }
 0x57d   : > { %2535 = vmatpush3.bf16.xpose.msra.mxu1 %v1055_v20  ;;  %2536 = vmatprep.mubr.msk.bf16.mxu1 %vm3107_vm2, %v3106_v38 }
 0x57e   : > { %2531 = vmatmul.mubr.msk.bf16.vlgmr.msra.gmra.mrb[4].mxu0 %vm926_vm5, %v950_v21  ;;  %2546 = vmatprep.subr.bf16.mxu1 %v3106_v38 }
 0x57f   : > { %2541 = vmatpush3.bf16.xpose.msra.mxu0 %v1105_v22  ;;  %2542 = vmatprep.mubr.msk.bf16.mxu0 %vm3107_vm2, %v3106_v38 }
 0x580   : > { %2552 = vmatprep.subr.bf16.mxu0 %v3106_v38 }
 0x584   : > { %2537 = vmatmul.mubr.msk.bf16.vlgmr.msra.gmra.mrb[12].mxu1 %vm830_vm3, %v1048_v23 }
 0x585   : > { %2548 = vmatprep.mubr.msk.bf16.mxu1 %vm3107_vm2, %v3106_v38 }
 0x586   : > { %2543 = vmatmul.mubr.msk.bf16.vlgmr.msra.gmra.mrb[8].mxu0 %vm830_vm3, %v1098_v24 }
 0x587   : > { %2554 = vmatprep.mubr.msk.bf16.mxu0 %vm3107_vm2, %v3106_v38 }
 0x64f   : > { %v3581_v25 = vpop.f32.mrb[8].mxu1 }
 0x650   : > { %v2526_v26 = vpop.f32.mrb[9].mxu1 }
 0x651   : > { %v995_v27 = vpop.f32.mrb[10].mxu1  ;;  %v3583_v28 = vpop.f32.mrb[4].mxu0 }
 0x652   : > { %v1044_v29 = vpack.c.bf16 %v3583_v28, %v3581_v25  ;;  %v2527_v30 = vpop.f32.mrb[11].mxu1  ;;  %v2532_v31 = vpop.f32.mrb[5].mxu0 }
 0x653   : > { %v1041_v32 = vpop.f32.mrb[6].mxu0 }
 0x654   : > { %v2533_v33 = vpop.f32.mrb[7].mxu0 }
 0x657   : > { %v1091_v34 = vpop.f32.mrb[12].mxu1 }
 0x658   : > { %v2538_v35 = vpop.f32.mrb[13].mxu1  ;;  %v1147_v36 = vsel %vm926_vm5, %v1091_v34, -inf }
 0x659   : > { %1148 = vmax.xlane.f32.xlu0 %v1147_v36  ;;  %v1094_v37 = vpop.f32.mrb[14].mxu1  ;;  %v1141_v39 = vpop.f32.mrb[8].mxu0 }
 0x65a   : > { %v2539_v41 = vpop.f32.mrb[15].mxu1  ;;  %v2544_v42 = vpop.f32.mrb[9].mxu0  ;;  %v1150_v44 = vsel %vm926_vm5, %v1141_v39, -inf }
 0x65b   : > { %1151 = vmax.xlane.f32.xlu1 %v1150_v44  ;;  %v1144_v45 = vpop.f32.mrb[10].mxu0 }
 0x65c   : > { %v2545_v46 = vpop.f32.mrb[11].mxu0 }
 0x66c   : > { %1221 = vrot.lane.b32.xlu1 %v3539_v50, %s3110_s23 }
 0x670   : > { %1375 = vrot.lane.b32.xlu1 %v3527_v40, %s3111_s21 }
 0x674   : > { %1425 = vrot.lane.b32.xlu1 %v3529_v43, %s3111_s21 }
 0x678   : > { %1423 = vrot.lane.b32.xlu1 %v3529_v43, %s3112_s17 }
 0x6e6   : > { %v1149_v47 = vpop.xlane.xlu0 %1148 }
 0x6e7   : > { %v1153_v48 = vsub.f32 %v1091_v34, %v1149_v47 }
 0x6e8   : > { %v1152_v51 = vpop.xlane.xlu1 %1151 }
 0x6e9   : > { %v1155_v52 = vmul.f32 1.442695, %v1153_v48  ;;  %v1154_v53 = vsub.f32 %v1141_v39, %v1152_v51 }
 0x6eb   : > { %2787 = vpow2.f32 %v1155_v52  ;;  %v1157_v54 = vmul.f32 1.442695, %v1154_v53 }
 0x6ec   : > { %v1222_v55 = vpop.permute.xlu1 %1221 }
 0x6ed   : > { %2789 = vpow2.f32 %v1157_v54  ;;  %v1227_v56 = vsel %vm954_vm4, %v1222_v55, 0 }
 0x6ee   : > { %2553 = vmatpush3.bf16.msra.mxu0 %v1227_v56 }
 0x6ef   : > { %2564 = vmatprep.subr.bf16.mxu0 %v3106_v38 }
 0x6f0   : > { %v1376_v11 = vpop.permute.xlu1 %1375 }
 0x6f1   : > { %v1381_v23 = vsel %vm830_vm3, %v1376_v11, 0 }
 0x6f4   : > { %v1426_v12 = vpop.permute.xlu1 %1425 }
 0x6f5   : > { %v2788_v57 = vpop.eup %2787  ;;  %v1431_v13 = vsel %vm830_vm3, %v1426_v12, 0 }
 0x6f6   : > { %v1159_v58 = vsel %vm926_vm5, %v2788_v57, 0.0 }
 0x6f7   : > { %v2790_v59 = vpop.eup %2789  ;;  %1160 = vadd.xlane.f32.xlu0 %v1159_v58 }
 0x6f8   : > { %v1162_v60 = vsel %vm926_vm5, %v2790_v59, 0.0  ;;  %v1424_v14 = vpop.permute.xlu1 %1423 }
 0x6fb   : > { %1163 = vadd.xlane.f32.xlu0 %v1162_v60 }
 0x711   : > { %1172 = vrot.lane.b32.xlu0 %v3536_v49, %s3110_s23 }
 0x715   : > { %1373 = vrot.lane.b32.xlu0 %v3527_v40, %s3112_s17 }
 0x784   : > { %v1161_v61 = vpop.xlane.xlu0 %1160 }
 0x785   : > { %2791 = vrcp.f32 %v1161_v61 }
 0x788   : > { %v1164_v62 = vpop.xlane.xlu0 %1163 }
 0x789   : > { %2793 = vrcp.f32 %v1164_v62 }
 0x78c   : > { %v1173_v63 = vpop.permute.xlu0 %1172 }
 0x78d   : > { %v1178_v0 = vsel %vm954_vm4, %v1173_v63, 0 }
 0x78e   : > { %2547 = vmatpush3.bf16.msra.mxu1 %v1178_v0 }
 0x78f   : > { %v2792_v1 = vpop.eup %2791  ;;  %2558 = vmatprep.subr.bf16.mxu1 %v3106_v38 }
 0x790   : > { %v1167_v4 = vmul.f32 %v2792_v1, %v2788_v57  ;;  %v1374_v27 = vpop.permute.xlu0 %1373 }
 0x792   : > { %v1169_v6 = vpack.c.bf16 %v1167_v4, %v1167_v4 }
 0x793   : > { %v2794_v7 = vpop.eup %2793 }
 0x794   : > { %v1168_v8 = vmul.f32 %v2794_v7, %v2790_v59  ;;  %2549 = vmatmul.mubr.msk.bf16.vlgmr.msra.gmra.mrb[16].mxu1 %vm926_vm5, %v1169_v6 }
 0x795   : > { %2559 = vmatpush3.bf16.msra.mxu1 %v2766_v5  ;;  %2560 = vmatprep.mubr.msk.bf16.mxu1 %vm3107_vm2, %v3106_v38 }
 0x796   : > { %v1170_v10 = vpack.c.bf16 %v1168_v8, %v1168_v8  ;;  %2570 = vmatprep.subr.bf16.mxu1 %v3106_v38 }
 0x798   : > { %2555 = vmatmul.mubr.msk.bf16.vlgmr.msra.gmra.mrb[12].mxu0 %vm926_vm5, %v1170_v10 }
 0x799   : > { %2565 = vmatpush3.bf16.msra.mxu0 %v2765_v9  ;;  %2566 = vmatprep.mubr.msk.bf16.mxu0 %vm3107_vm2, %v3106_v38 }
 0x79a   : > { %2576 = vmatprep.subr.bf16.mxu0 %v3106_v38 }
 0x7a0   : > { %2567 = vmatmul.mubr.msk.bf16.vlgmr.msra.gmra.mrb[16].mxu0 %vm830_vm3, %v1044_v29 }
 0x7a1   : > { %2578 = vmatprep.mubr.msk.bf16.mxu0 %vm3107_vm2, %v3106_v38 }
 0x7a2   : > { %2577 = vmatpush3.bf16.xpose.msra.mxu0 %v1431_v13 }
 0x7a3   : > { %2588 = vmatprep.subr.bf16.mxu0 %v3106_v38 }
 0x7a9   : > { %2579 = vmatmul.mubr.msk.bf16.vlgmr.msra.gmra.mrb[20].mxu0 %vm830_vm3, %v1424_v14 }
 0x7aa   : > { %2590 = vmatprep.mubr.msk.bf16.mxu0 %vm3107_vm2, %v3106_v38 }
 0x867   : > { %v1214_v15 = vpop.f32.mrb[16].mxu1 }
 0x868   : > { %v2550_v16 = vpop.f32.mrb[17].mxu1 }
 0x869   : > { %v1217_v17 = vpop.f32.mrb[18].mxu1  ;;  %v2767_v16 = vld [vmem:[%s3441_s8 + $0x10] sm:$0xff]  }
 0x86a   : > { %v2551_v18 = vpop.f32.mrb[19].mxu1 }
 0x86b   : > { %v1263_v19 = vpop.f32.mrb[12].mxu0 }
 0x86c   : > { %v1269_v20 = vpack.c.bf16 %v1263_v19, %v1214_v15  ;;  %v2556_v21 = vpop.f32.mrb[13].mxu0 }
 0x86d   : > { %v1266_v22 = vpop.f32.mrb[14].mxu0 }
 0x86e   : > { %v2557_v24 = vpop.f32.mrb[15].mxu0  ;;  %2561 = vmatmul.mubr.msk.bf16.vlgmr.msra.gmra.mrb[20].mxu1 %vm830_vm3, %v1269_v20 }
 0x86f   : > { %2571 = vmatpush3.bf16.xpose.msra.mxu1 %v1381_v23  ;;  %2572 = vmatprep.mubr.msk.bf16.mxu1 %vm3107_vm2, %v3106_v38 }
 0x870   : > { %2582 = vmatprep.subr.bf16.mxu1 %v3106_v38 }
 0x873   : > { %v1366_v25 = vpop.f32.mrb[16].mxu0 }
 0x874   : > { %v2568_v26 = vpop.f32.mrb[17].mxu0 }
 0x875   : > { %v1369_v28 = vpop.f32.mrb[18].mxu0 }
 0x876   : > { %v2569_v29 = vpop.f32.mrb[19].mxu0  ;;  %2573 = vmatmul.mubr.msk.bf16.vlgmr.msra.gmra.mrb[24].mxu1 %vm830_vm3, %v1374_v27 }
 0x877   : > { %2584 = vmatprep.mubr.msk.bf16.mxu1 %vm3107_vm2, %v3106_v38 }
 0x87c   : > { %v1467_v30 = vpop.f32.mrb[20].mxu0 }
 0x87d   : > { %v2580_v31 = vpop.f32.mrb[21].mxu0  ;;  %v1476_v32 = vsel %vm926_vm5, %v1467_v30, -inf }
 0x87e   : > { %1477 = vmax.xlane.f32.xlu1 %v1476_v32  ;;  %v1470_v33 = vpop.f32.mrb[22].mxu0 }
 0x87f   : > { %v2581_v34 = vpop.f32.mrb[23].mxu0 }
 0x88f   : > { %1545 = vrot.lane.b32.xlu1 %v3539_v50, %s3112_s17 }
 0x893   : > { %1651 = vrot.lane.b32.xlu1 %v3527_v40, %s3113_s3 }
 0x897   : > { %1701 = vrot.lane.b32.xlu1 %v3529_v43, %s3113_s3 }
 0x89b   : > { %1699 = vrot.lane.b32.xlu1 %v3529_v43, %s3114_s20 }
 0x90b   : > { %v1478_v35 = vpop.xlane.xlu1 %1477 }
 0x90c   : > { %v1480_v39 = vsub.f32 %v1467_v30, %v1478_v35 }
 0x90e   : > { %v1483_v41 = vmul.f32 1.442695, %v1480_v39 }
 0x90f   : > { %v1546_v36 = vpop.permute.xlu1 %1545 }
 0x910   : > { %v1551_v37 = vsel %vm954_vm4, %v1546_v36, 0  ;;  %2795 = vpow2.f32 %v1483_v41 }
 0x911   : > { %2589 = vmatpush3.bf16.msra.mxu0 %v1551_v37 }
 0x912   : > { %2600 = vmatprep.subr.bf16.mxu0 %v3106_v38 }
 0x913   : > { %v1652_v1 = vpop.permute.xlu1 %1651 }
 0x914   : > { %v1657_v5 = vsel %vm830_vm3, %v1652_v1, 0  ;;  %v2768_v1 = vld [vmem:[%s3441_s8 + $0x18] sm:$0xff]   ;;  %s3845_s8 = scalar_lea.vmem [#allocation7], %s3438_s10 }
 0x917   : > { %v1702_v22 = vpop.permute.xlu1 %1701 }
 0x918   : > { %v1707_v27 = vsel %vm830_vm3, %v1702_v22, 0 }
 0x91a   : > { %v2796_v53 = vpop.eup %2795 }
 0x91b   : > { %v1488_v56 = vsel %vm926_vm5, %v2796_v53, 0.0  ;;  %v1700_v29 = vpop.permute.xlu1 %1699 }
 0x941   : > { %v1316_v42 = vpop.f32.mrb[20].mxu1 }
 0x942   : > { %v3643_v44 = vadd.f32 %v1366_v25, %v1316_v42  ;;  %v2562_v45 = vpop.f32.mrb[21].mxu1 }
 0x943   : > { %v1319_v46 = vpop.f32.mrb[22].mxu1 }
 0x944   : > { %v3645_v47 = vadd.f32 %v1369_v28, %v1319_v46  ;;  %v2563_v48 = vpop.f32.mrb[23].mxu1 }
 0x949   : > { %v1417_v51 = vpop.f32.mrb[24].mxu1 }
 0x94a   : > { %v2574_v43 = vpop.f32.mrb[25].mxu1  ;;  %v1473_v52 = vsel %vm926_vm5, %v1417_v51, -inf }
 0x94b   : > { %1474 = vmax.xlane.f32.xlu0 %v1473_v52  ;;  %v1420_v54 = vpop.f32.mrb[26].mxu1 }
 0x94c   : > { %v2575_v55 = vpop.f32.mrb[27].mxu1 }
 0x94f   : > { %1489 = vadd.xlane.f32.xlu0 %v1488_v56 }
 0x9d8   : > { %v1475_v57 = vpop.xlane.xlu0 %1474 }
 0x9d9   : > { %v1479_v58 = vsub.f32 %v1417_v51, %v1475_v57 }
 0x9db   : > { %v1481_v59 = vmul.f32 1.442695, %v1479_v58 }
 0x9dc   : > { %v1490_v60 = vpop.xlane.xlu0 %1489 }
 0x9dd   : > { %2797 = vpow2.f32 %v1481_v59 }
 0x9de   : > { %2799 = vrcp.f32 %v1490_v60 }
 0x9e7   : > { %v2798_v61 = vpop.eup %2797 }
 0x9e8   : > { %v2800_v62 = vpop.eup %2799  ;;  %v1485_v63 = vsel %vm926_vm5, %v2798_v61, 0.0 }
 0x9e9   : > { %v1494_v0 = vmul.f32 %v2800_v62, %v2796_v53  ;;  %1486 = vadd.xlane.f32.xlu0 %v1485_v63 }
 0x9eb   : > { %v1496_v4 = vpack.c.bf16 %v1494_v0, %v1494_v0 }
 0x9ed   : > { %2591 = vmatmul.mubr.msk.bf16.vlgmr.msra.gmra.mrb[24].mxu0 %vm926_vm5, %v1496_v4 }
 0x9ee   : > { %2601 = vmatpush3.bf16.xpose.msra.mxu0 %v1657_v5  ;;  %2602 = vmatprep.mubr.msk.bf16.mxu0 %vm3107_vm2, %v3106_v38 }
 0x9ef   : > { %2612 = vmatprep.subr.bf16.mxu0 %v3106_v38 }
 0x9ff   : > { %1497 = vrot.lane.b32.xlu0 %v3536_v49, %s3112_s17 }
 0xa03   : > { %1649 = vrot.lane.b32.xlu0 %v3527_v40, %s3114_s20 }
 0xa76   : > { %v1487_v6 = vpop.xlane.xlu0 %1486 }
 0xa77   : > { %2801 = vrcp.f32 %v1487_v6 }
 0xa7a   : > { %v1498_v7 = vpop.permute.xlu0 %1497 }
 0xa7b   : > { %v1503_v8 = vsel %vm954_vm4, %v1498_v7, 0 }
 0xa7c   : > { %2583 = vmatpush3.bf16.msra.mxu1 %v1503_v8 }
 0xa7d   : > { %2594 = vmatprep.subr.bf16.mxu1 %v3106_v38 }
 0xa7e   : > { %v1650_v9 = vpop.permute.xlu0 %1649 }
 0xa7f   : > { %2603 = vmatmul.mubr.msk.bf16.vlgmr.msra.gmra.mrb[28].mxu0 %vm830_vm3, %v1650_v9 }
 0xa80   : > { %2614 = vmatprep.mubr.msk.bf16.mxu0 %vm3107_vm2, %v3106_v38 }
 0xa81   : > { %v2802_v10 = vpop.eup %2801 }
 0xa82   : > { %v1493_v11 = vmul.f32 %v2802_v10, %v2798_v61 }
 0xa84   : > { %v1495_v12 = vpack.c.bf16 %v1493_v11, %v1493_v11 }
 0xa86   : > { %2585 = vmatmul.mubr.msk.bf16.vlgmr.msra.gmra.mrb[28].mxu1 %vm926_vm5, %v1495_v12 }
 0xa87   : > { %2596 = vmatprep.mubr.msk.bf16.mxu1 %vm3107_vm2, %v3106_v38  ;;  %2595 = vmatpush3.bf16.msra.mxu1 %v2767_v16 }
 0xa88   : > { %2606 = vmatprep.subr.bf16.mxu1 %v3106_v38 }
 0xac0   : > { %v1587_v40 = vpop.f32.mrb[24].mxu0 }
 0xac1   : > { %v2592_v13 = vpop.f32.mrb[25].mxu0 }
 0xac2   : > { %v1590_v14 = vpop.f32.mrb[26].mxu0 }
 0xac3   : > { %v2593_v15 = vpop.f32.mrb[27].mxu0 }
 0xac4   : > { %v2439_v15 = vld [vmem:[%s3845_s8] ss:$0 sm:$0xff] }
 0xb52   : > { %v1693_v17 = vpop.f32.mrb[28].mxu0 }
 0xb53   : > { %v2604_v18 = vpop.f32.mrb[29].mxu0  ;;  %v1749_v19 = vsel %vm926_vm5, %v1693_v17, -inf }
 0xb54   : > { %1750 = vmax.xlane.f32.xlu0 %v1749_v19  ;;  %v1696_v20 = vpop.f32.mrb[30].mxu0 }
 0xb55   : > { %v2605_v21 = vpop.f32.mrb[31].mxu0 }
 0xb59   : > { %v1539_v23 = vpop.f32.mrb[28].mxu1 }
 0xb5a   : > { %v1593_v24 = vpack.c.bf16 %v1587_v40, %v1539_v23  ;;  %v2586_v25 = vpop.f32.mrb[29].mxu1 }
 0xb5b   : > { %v1542_v26 = vpop.f32.mrb[30].mxu1 }
 0xb5c   : > { %v2587_v28 = vpop.f32.mrb[31].mxu1  ;;  %2597 = vmatmul.mubr.msk.bf16.vlgmr.msra.gmra.mrb[32].mxu1 %vm830_vm3, %v1593_v24 }
 0xb5d   : > { %2607 = vmatpush3.bf16.xpose.msra.mxu1 %v1707_v27  ;;  %2608 = vmatprep.mubr.msk.bf16.mxu1 %vm3107_vm2, %v3106_v38 }
 0xb5e   : > { %2618 = vmatprep.subr.bf16.mxu1 %v3106_v38 }
 0xb64   : > { %2609 = vmatmul.mubr.msk.bf16.vlgmr.msra.gmra.mrb[36].mxu1 %vm830_vm3, %v1700_v29 }
 0xb65   : > { %2620 = vmatprep.mubr.msk.bf16.mxu1 %vm3107_vm2, %v3106_v38 }
 0xbe1   : > { %v1751_v30 = vpop.xlane.xlu0 %1750 }
 0xbe2   : > { %v1755_v31 = vsub.f32 %v1693_v17, %v1751_v30 }
 0xbe4   : > { %v1757_v32 = vmul.f32 1.442695, %v1755_v31 }
 0xbe6   : > { %2803 = vpow2.f32 %v1757_v32 }
 0xbf0   : > { %v2804_v33 = vpop.eup %2803 }
 0xbf1   : > { %v1761_v34 = vsel %vm926_vm5, %v2804_v33, 0.0 }
 0xbf2   : > { %1762 = vadd.xlane.f32.xlu0 %v1761_v34  ;;  %v2770_v34 = vld [vmem:[%s3482_s4 + $0x8] sm:$0xff]  }
 0xc2f   : > { %v1640_v35 = vpop.f32.mrb[32].mxu1 }
 0xc30   : > { %v1647_v36 = vadd.f32 %v1640_v35, %v3643_v44  ;;  %v2598_v37 = vpop.f32.mrb[33].mxu1 }
 0xc31   : > { %v1643_v39 = vpop.f32.mrb[34].mxu1 }
 0xc32   : > { %v1648_v41 = vadd.f32 %v1643_v39, %v3645_v47  ;;  %v2599_v42 = vpop.f32.mrb[35].mxu1 }
 0xc37   : > { %v1743_v45 = vpop.f32.mrb[36].mxu1 }
 0xc38   : > { %v2610_v46 = vpop.f32.mrb[37].mxu1  ;;  %v1752_v48 = vsel %vm926_vm5, %v1743_v45, -inf }
 0xc39   : > { %1753 = vmax.xlane.f32.xlu1 %v1752_v48  ;;  %v1746_v51 = vpop.f32.mrb[38].mxu1  ;;  %v2440_v46 = vld [vmem:[%s3846_s26] ss:$0 sm:$0xff] }
 0xc3a   : > { %v2611_v43 = vpop.f32.mrb[39].mxu1 }
 0xc4a   : > { %1821 = vrot.lane.b32.xlu1 %v3539_v50, %s3114_s20 }
 0xc7f   : > { %v1763_v57 = vpop.xlane.xlu0 %1762 }
 0xcc6   : > { %v1754_v52 = vpop.xlane.xlu1 %1753 }
 0xcc7   : > { %v1756_v53 = vsub.f32 %v1743_v45, %v1754_v52 }
 0xcc9   : > { %v1759_v54 = vmul.f32 1.442695, %v1756_v53  ;;  %v2441_v53 = vld [vmem:[%s3847_s29] ss:$0 sm:$0xff] }
 0xcca   : > { %v1822_v55 = vpop.permute.xlu1 %1821 }
 0xccb   : > { %2805 = vpow2.f32 %v1759_v54  ;;  %v1827_v44 = vsel %vm954_vm4, %v1822_v55, 0 }
 0xccc   : > { %2619 = vmatpush3.bf16.msra.mxu1 %v1827_v44  ;;  %2807 = vrcp.f32 %v1763_v57  ;;  %v2772_v57 = vld [vmem:[%s3487_s30 + $0x8] sm:$0xff]  }
 0xccd   : > { %2630 = vmatprep.subr.bf16.mxu1 %v3106_v38 }
 0xcd5   : > { %v2806_v47 = vpop.eup %2805 }
 0xcd6   : > { %v1764_v56 = vsel %vm926_vm5, %v2806_v47, 0.0  ;;  %v2808_v50 = vpop.eup %2807 }
 0xcd7   : > { %1765 = vadd.xlane.f32.xlu0 %v1764_v56  ;;  %v1769_v59 = vmul.f32 %v2808_v50, %v2804_v33  ;;  %v2769_v33 = vld [vmem:[%s3482_s4] sm:$0xff]   ;;  %v2773_v50 = vld [vmem:[%s3487_s30 + $0x10] sm:$0xff]   ;;  %s3848_s4 = scalar_lea.vmem [#allocation11], %s3438_s10 }
 0xcd8   : > { %v2771_v56 = vld [vmem:[%s3487_s30] sm:$0xff]  }
 0xcd9   : > { %v1771_v62 = vpack.c.bf16 %v1769_v59, %v1769_v59  ;;  %v2442_v59 = vld [vmem:[%s3848_s4] ss:$0 sm:$0xff] }
 0xced   : > { %1773 = vrot.lane.b32.xlu0 %v3536_v49, %s3114_s20 }
 0xd64   : > { %v1766_v58 = vpop.xlane.xlu0 %1765 }
 0xd65   : > { %2809 = vrcp.f32 %v1766_v58  ;;  %v2774_v58 = vld [vmem:[%s3487_s30 + $0x18] sm:$0xff]  }
 0xd68   : > { %v1774_v60 = vpop.permute.xlu0 %1773 }
 0xd69   : > { %v1779_v61 = vsel %vm954_vm4, %v1774_v60, 0 }
 0xd6a   : > { %2613 = vmatpush3.bf16.msra.mxu0 %v1779_v61 }
 0xd6b   : > { %2624 = vmatprep.subr.bf16.mxu0 %v3106_v38 }
 0xd6d   : > { %2615 = vmatmul.mubr.msk.bf16.vlgmr.msra.gmra.mrb[32].mxu0 %vm926_vm5, %v1771_v62 }
 0xd6e   : > { %2626 = vmatprep.mubr.msk.bf16.mxu0 %vm3107_vm2, %v3106_v38  ;;  %2625 = vmatpush3.bf16.msra.mxu0 %v2768_v1 }
 0xd6f   : > { %v2810_v49 = vpop.eup %2809  ;;  %2638 = vmatprep.subr.bf16.mxu0 %v3106_v38 }
 0xd70   : > { %v1770_v63 = vmul.f32 %v2810_v49, %v2806_v47 }
 0xd72   : > { %v1772_v0 = vpack.c.bf16 %v1770_v63, %v1770_v63 }
 0xd74   : > { %2621 = vmatmul.mubr.msk.bf16.vlgmr.msra.gmra.mrb[40].mxu1 %vm926_vm5, %v1772_v0 }
 0xd75   : > { %2634 = vmatprep.mubr.msk.bf16.mxu1 %vm3107_vm2, %v3106_v38  ;;  %2631 = vmatpush3.bf16.msra.mxu1 %v2769_v33 }
 0xd76   : > { %2632 = vmatprep.subr.bf16.mxu1 %v3106_v38 }
 0xd79   : > { %2633 = vmatpush3.bf16.msra.mxu1 %v2770_v34 }
 0xe40   : > { %v1815_v4 = vpop.f32.mrb[32].mxu0 }
 0xe41   : > { %v2616_v5 = vpop.f32.mrb[33].mxu0 }
 0xe42   : > { %v1818_v6 = vpop.f32.mrb[34].mxu0 }
 0xe43   : > { %v2617_v7 = vpop.f32.mrb[35].mxu0 }
 0xe47   : > { %v1863_v8 = vpop.f32.mrb[40].mxu1 }
 0xe48   : > { %v1869_v9 = vpack.c.bf16 %v1863_v8, %v1815_v4  ;;  %v2622_v10 = vpop.f32.mrb[41].mxu1 }
 0xe49   : > { %v1866_v11 = vpop.f32.mrb[42].mxu1 }
 0xe4a   : > { %v2623_v12 = vpop.f32.mrb[43].mxu1  ;;  %2627 = vmatmul.mubr.msk.bf16.vlgmr.msra.gmra.mrb[36].mxu0 %vm830_vm3, %v1869_v9 }
 0xe4b   : > { %2646 = vmatprep.mubr.msk.bf16.mxu0 %vm3107_vm2, %v3106_v38  ;;  %2639 = vmatpush3.bf16.msra.mxu0 %v2771_v56 }
 0xe4c   : > { %2640 = vmatprep.subr.bf16.mxu0 %v3106_v38 }
 0xe4f   : > { %2641 = vmatpush3.bf16.msra.mxu0 %v2772_v57 }
 0xe50   : > { %2642 = vmatprep.subr.bf16.mxu0 %v3106_v38 }
 0xe53   : > { %2643 = vmatpush3.bf16.msra.mxu0 %v2773_v50 }
 0xe54   : > { %2644 = vmatprep.subr.bf16.mxu0 %v3106_v38 }
 0xe57   : > { %2645 = vmatpush3.bf16.msra.mxu0 %v2774_v58 }
 0xf1d   : > { %v1916_v40 = vpop.f32.mrb[36].mxu0 }
 0xf1e   : > { %v1923_v13 = vadd.f32 %v1916_v40, %v1647_v36  ;;  %v2628_v14 = vpop.f32.mrb[37].mxu0 }
 0xf1f   : > { %v1919_v16 = vpop.f32.mrb[38].mxu0 }
 0xf20   : > { %v1925_v17 = vadd.f32 %v1923_v13, %v3494_v2  ;;  %v1924_v18 = vadd.f32 %v1919_v16, %v1648_v41  ;;  %v2629_v19 = vpop.f32.mrb[39].mxu0 }
 0xf22   : > { %v3705_v20 = vadd.f32 %v2439_v15, %v1925_v17  ;;  %v1926_v21 = vadd.f32 %v1924_v18, %v3496_v3 }
 0xf24   : > { %v3708_v22 = vadd.f32 %v2439_v15, %v1926_v21  ;;  %v1938_v23 = vsel %vm708_vm1, %v3705_v20, 0.0 }
 0xf25   : > { %1939 = vadd.xlane.f32.xlu1 %v1938_v23 }
 0xf26   : > { %v1941_v24 = vsel %vm708_vm1, %v3708_v22, 0.0 }
 0xf27   : > { %1942 = vadd.xlane.f32.xlu0 %v1941_v24  ;;  %v2448_v24 = vld [vmem:[%s692_s13] ss:$0 sm:$0xff] }
 0xfb2   : > { %v1940_v25 = vpop.xlane.xlu1 %1939 }
 0xfb3   : > { %v1944_v2 = vmul.f32 0.03125, %v1940_v25 }
 0xfb4   : > { %v1943_v26 = vpop.xlane.xlu0 %1942 }
 0xfb5   : > { %v1946_v27 = vsub.f32 %v3705_v20, %v1944_v2  ;;  %v1945_v28 = vmul.f32 0.03125, %v1943_v26 }
 0xfb7   : > { %v1947_v3 = vsub.f32 %v3708_v22, %v1945_v28  ;;  %v1948_v29 = vmul.f32 %v1946_v27, %v1946_v27 }
 0xfb9   : > { %v1950_v30 = vsel %vm708_vm1, %v1948_v29, 0.0  ;;  %v1949_v31 = vmul.f32 %v1947_v3, %v1947_v3 }
 0xfba   : > { %1951 = vadd.xlane.f32.xlu0 %v1950_v30 }
 0xfbb   : > { %v1953_v32 = vsel %vm708_vm1, %v1949_v31, 0.0 }
 0xfbc   : > { %1954 = vadd.xlane.f32.xlu1 %v1953_v32 }
0x1047   : > { %v1952_v35 = vpop.xlane.xlu0 %1951 }
0x1048   : > { %v1956_v36 = vmul.f32 0.03125, %v1952_v35 }
0x1049   : > { %v1955_v37 = vpop.xlane.xlu1 %1954 }
0x104a   : > { %v1958_v39 = vadd.f32 1e-05, %v1956_v36  ;;  %v1957_v41 = vmul.f32 0.03125, %v1955_v37 }
0x104c   : > { %2811 = vrsqrt.f32 %v1958_v39  ;;  %v1959_v42 = vadd.f32 1e-05, %v1957_v41 }
0x104e   : > { %2813 = vrsqrt.f32 %v1959_v42 }
0x1056   : > { %v2812_v45 = vpop.eup %2811 }
0x1057   : > { %v1962_v48 = vmul.f32 %v2812_v45, %v1946_v27 }
0x1058   : > { %v2814_v51 = vpop.eup %2813 }
0x1059   : > { %v1970_v43 = vmul.f32 %v2440_v46, %v1962_v48  ;;  %v1963_v52 = vmul.f32 %v2814_v51, %v1947_v3 }
0x105b   : > { %v1971_v54 = vmul.f32 %v2440_v46, %v1963_v52  ;;  %v1978_v55 = vadd.f32 %v2441_v53, %v1970_v43 }
0x105d   : > { %v1979_v44 = vadd.f32 %v2441_v53, %v1971_v54 }
0x105f   : > { %v1980_v47 = vpack.c.bf16 %v1979_v44, %v1978_v55 }
0x1061   : > { %2635 = vmatmul.mubr.msk.bf16.vlgmr.msra.gmra.mrb[44].mxu1 %vm708_vm1, %v1980_v47 }
0x1134   : > { %v2041_v60 = vpop.f32.mrb[44].mxu1 }
0x1135   : > { %v2042_v61 = vadd.f32 %v2442_v59, %v2041_v60  ;;  %v2636_v62 = vpop.f32.mrb[45].mxu1 }
0x1136   : > { %v2044_v49 = vpop.f32.mrb[46].mxu1 }
0x1137   : > { %v2048_v63 = vmin.f32 %v2042_v61, 20.0  ;;  %v2045_v0 = vadd.f32 %v2442_v59, %v2044_v49  ;;  %v2637_v1 = vpop.f32.mrb[47].mxu1 }
0x1139   : > { %v2050_v4 = vmul.f32 1.442695, %v2048_v63  ;;  %v2049_v5 = vmin.f32 %v2045_v0, 20.0 }
0x113b   : > { %2815 = vpow2.f32 %v2050_v4  ;;  %v2052_v6 = vmul.f32 1.442695, %v2049_v5 }
0x113d   : > { %2817 = vpow2.f32 %v2052_v6 }
0x1145   : > { %v2816_v7 = vpop.eup %2815 }
0x1146   : > { %v2054_v8 = vadd.f32 1.0, %v2816_v7 }
0x1147   : > { %v2818_v9 = vpop.eup %2817 }
0x1148   : > { %v2056_v38 = vmul.f32 %v2054_v8, %v2054_v8  ;;  %v2055_v10 = vadd.f32 1.0, %v2818_v9 }
0x114a   : > { %v2062_v11 = vadd.f32 1.0, %v2056_v38  ;;  %v2057_v12 = vmul.f32 %v2055_v10, %v2055_v10  ;;  %v2446_v13 = vadd.f32 -1.0, %v2056_v38 }
0x114c   : > { %2819 = vrcp.f32 %v2062_v11  ;;  %v2063_v40 = vadd.f32 1.0, %v2057_v12  ;;  %v2447_v14 = vadd.f32 -1.0, %v2057_v12  ;;  %v2060_v16 = vmul.f32 %v2446_v13, %v2042_v61 }
0x114e   : > { %2821 = vrcp.f32 %v2063_v40  ;;  %v2061_v17 = vmul.f32 %v2447_v14, %v2045_v0 }
0x1156   : > { %v2820_v15 = vpop.eup %2819 }
0x1157   : > { %v2066_v19 = vmul.f32 %v2820_v15, %v2060_v16 }
0x1158   : > { %v2822_v18 = vpop.eup %2821 }
0x1159   : > { %v2067_v21 = vmul.f32 %v2822_v18, %v2061_v17 }
0x115b   : > { %v2068_v23 = vpack.c.bf16 %v2067_v21, %v2066_v19 }
0x115d   : > { %2647 = vmatmul.mubr.msk.bf16.vlgmr.msra.gmra.mrb[40].mxu0 %vm2108_vm6, %v2068_v23 }
0x1230   : > { %v2146_v25 = vpop.f32.mrb[40].mxu0 }
0x1231   : > { %v2147_v2 = vadd.f32 %v2448_v24, %v2146_v25  ;;  %v2648_v26 = vpop.f32.mrb[41].mxu0 }
0x1232   : > { %v2149_v27 = vpop.f32.mrb[42].mxu0 }
0x1233   : > { %v2153_v28 = vadd.f32 %v2147_v2, %v3705_v20  ;;  %v2150_v3 = vadd.f32 %v2448_v24, %v2149_v27  ;;  %v2649_v29 = vpop.f32.mrb[43].mxu0 }
0x1235   : > { %2155 = vst.msk [vmem:[#allocation13] sm:$0xff] %vm708_vm1, %v2153_v28  ;;  %v2154_v30 = vadd.f32 %v2150_v3, %v3708_v22 }
0x1237   : > { %2156 = vst.msk [vmem:[#allocation13 + $0x8] sm:$0xff] %vm708_vm1, %v2154_v30 }
0x1238   : > { %3014 = shalt.err (!%p3011_p4)
}
0x1239   : > { %s3850_s25 = sld [smem:[#allocation30_spill]] }
0x123f   : > { %s3851_s14 = smov %s3850_s25  ;;  %s3015_s16 = scalar_lea.hbm %s3850_s25, 256 }
0x1240   : > { %p3016_p11 = scmp.ne.s32.totalorder %s3851_s14, %s3015_s16  ;;  %p3021_p1 = scmp.lt.u32.totalorder %s3015_s16, %s3851_s14 }
0x1242   : > { %p3017_p9 = pnand %p3016_p11, %p2691_p8 }
0x1244   : > { %p3018_p10 = pneg %p3017_p9 }
0x1246   : > { %p3023_p12 = pnand %p3021_p1, %p3018_p10 }
0x1248   : > { %3026 = shalt.err (!%p3023_p12)
}
0x1249   : > { %s3116_s21 = smov 128   ;;  %s3117_s17 = smov 8  }
0x124a   : > { %2665 = dma.vmem_to_hbm [thread:$0]  (%p2691_p8), %s2167_s28, 256, %s3851_s14, [#allocation4], %s3116_s21, %s3116_s21, %s3117_s17  }
0x124b   : > { %3068 = dma.done.wait (%p2691_p8), [#allocation4], 256  }
0x124c   : > { %3070 = vsyncadd (%p2691_p8), [#allocation4], 4294967040 }
0x124d PF: > { %s3852_s8 = sld [smem:[#allocation21_spill]]  ;;  %s3853_s29 = sld [smem:[#allocation19_spill]] }
0x124e   : > { %s3854_s23 = sld [smem:[#allocation23_spill]]  ;;  %s3855_s24 = sld [smem:[#allocation20_spill]] }
0x124f   : > { %s3856_s25 = sld [smem:[#allocation22_spill]]  ;;  %s3857_s21 = smov %s3077_s22 }
0x1253   : > { %s33_s26 = sadd.s32 1, %s3852_s8   ;;  %s3858_s22 = smov %s3853_s29 }
0x1254   : > { %p30_p13 = scmp.ge.s32.totalorder %s33_s26, 4  }
0x1256   :  { %32 = sbr.rel (!%p30_p13) target bundleno = 18 (0x12), region = 185 }
0x125d   :  { %2182 = vsyncpa [#allocation3], 1 }
0x125e   :  { %2184 = vsyncpa [#allocation3 + $0x1], 1 }
0x125f   :  { %2185 = vsyncpa [#allocation6], 1 }
0x1260   :  { %2187 = vsyncpa [#allocation6 + $0x1], 1 }
0x1261   :  { %2188 = vsyncpa [#allocation9], 1 }
0x1262   :  { %2190 = vsyncpa [#allocation9 + $0x1], 1 }
0x1263   :  { %2191 = vsyncpa [#allocation12], 1 }
0x1264   :  { %2193 = vsyncpa [#allocation12 + $0x1], 1 }
0x1265   :  { %2194 = vsyncpa [#allocation4], 1 }
0x1266   :  { %2196 = vsyncpa [#allocation4 + $0x1], 1 }

</bundles_post_ra>
